<compile_context>
chip_gen: v7x
topology: tpu7x:2x2x1
jax: 0.10.0
libtpu: 0.0.40
codegen_flags: <defaults>
</compile_context>

<pallas_src>
import functools
import math

import jax
import jax.numpy as jnp
import numpy as np
from jax.experimental import pallas as pl
from jax.experimental.pallas import tpu as pltpu

LOG_2PI = math.log(2.0 * math.pi)


def _haar_matrix(h, w):
    """Constant (h*w, 4*hh*wh) matrix M with x_(C, h*w) @ M = [LL|LH|HL|HH].

    Input pixel p = i*w + j indexes rows; output column band*hh*wh + ih*wh + jw
    holds the 0.5-scaled 2x2 Haar combination of pixels (2ih,2jw), (2ih,2jw+1),
    (2ih+1,2jw), (2ih+1,2jw+1)  (a, b, c, d).
    """
    hh, wh = h // 2, w // 2
    no = hh * wh
    m = np.zeros((h * w, 4 * no), np.float32)
    signs = ((1, 1, 1, 1),     # LL = 0.5 (a + b + c + d)
             (1, -1, 1, -1),   # LH = 0.5 (a - b + c - d)
             (1, 1, -1, -1),   # HL = 0.5 (a + b - c - d)
             (1, -1, -1, 1))   # HH = 0.5 (a - b - c + d)
    for ih in range(hh):
        for jw in range(wh):
            q = ih * wh + jw
            p00 = (2 * ih) * w + 2 * jw
            p01 = p00 + 1
            p10 = (2 * ih + 1) * w + 2 * jw
            p11 = p10 + 1
            for band, (sa, sb, sc, sd) in enumerate(signs):
                col = band * no + q
                m[p00, col] = 0.5 * sa
                m[p01, col] = 0.5 * sb
                m[p10, col] = 0.5 * sc
                m[p11, col] = 0.5 * sd
    return m


# ----------------------------------------------------------------------------
# The whole WaveletFlow pyramid for one sample (grid is over the batch).
# ----------------------------------------------------------------------------
def _pyramid_kernel(*refs, n_levels, base_level):
    n_sub = n_levels - base_level
    x_ref = refs[0]
    d_refs = refs[1:1 + n_sub]
    (w_enc_ref, b_enc_ref, w_proj_ref, b_proj_ref, logs_ref, bias_ref,
     base_logs_ref, base_bias_ref) = refs[1 + n_sub:9 + n_sub]
    z_refs = refs[9 + n_sub:9 + 2 * n_sub]
    zb_ref = refs[9 + 2 * n_sub]
    ll_ref = refs[9 + 2 * n_sub + 1]

    low = x_ref[...]                       # (C, H*W): NCHW, spatial on lanes
    c = low.shape[0]

    for li in range(n_sub):                # li = 0 is level n_levels (top)
        d = d_refs[li][...]                # (P_in, 4*P_out) Haar combine matrix
        no = d.shape[1] // 4               # P_out = Hh*Wh at this level
        # Haar DWT of the whole level as ONE MXU matmul (single read of x).
        t = jnp.dot(low, d, preferred_element_type=jnp.float32)   # (C, 4*no)
        low = t[:, 0:no]                                          # LL -> next level
        # high band with channel order [LH(C), HL(C), HH(C)]  -> (3C, no)
        high = jnp.concatenate(
            [t[:, no:2 * no], t[:, 2 * no:3 * no], t[:, 3 * no:4 * no]], axis=0)

        # conditioning: fused 1x1-conv encoder (ReLU) + projection, all on-chip
        cond = jnp.maximum(
            jnp.dot(w_enc_ref[li], low, preferred_element_type=jnp.float32)
            + b_enc_ref[li], 0.0)                                  # (C_cond, no)
        shift = (jnp.dot(w_proj_ref[li], cond,
                         preferred_element_type=jnp.float32)
                 + b_proj_ref[li])                                 # (3C, no)

        # conditional affine glow step on the high band (exp -> EUP, free slot)
        scale = jnp.exp(logs_ref[li])                              # (3C, 1)
        z_refs[li][...] = high * scale + bias_ref[li] + shift      # (3C, no)

    # base flow on the final low band, shape (C, (2**base_level)**2)
    base_sp = low.shape[1]
    blogs = base_logs_ref[...]             # (C, 1)
    zb = low * jnp.exp(blogs) + base_bias_ref[...]
    zb_ref[...] = zb

    # Only the base-level likelihood survives in the PyTorch forward() (each
    # level overwrites res['likelihood']), so intermediate ones are skipped.
    d_base = float(c * base_sp)
    logdet = float(base_sp) * jnp.sum(blogs, keepdims=True)        # (1, 1)
    logp = -0.5 * (jnp.sum(zb * zb, keepdims=True) + d_base * LOG_2PI)
    nll = -(logp + logdet)
    # bits/dim plus the exact log(0.5) correction:
    #   -c*h*w*log(0.5)*(n_levels - level)/(log(2)*c*h*w) == +(n_levels - level)
    bpd = nll * (1.0 / (math.log(2.0) * d_base)) + float(n_levels - base_level)
    ll_ref[...] = bpd


# ----------------------------------------------------------------------------
# Wrapper (module boundary stays NCHW; only free reshapes, no transposes).
# ----------------------------------------------------------------------------
_PARAM_ORDER = ("w_enc", "b_enc", "w_proj", "b_proj", "logs", "bias",
                "base_logs", "base_bias")


def init_params(key, C, C_cond, n_levels, base_level):
    """Parameters stacked over sub-flow levels in processing order
    (index 0 == level n_levels, ..., index n_sub-1 == level base_level+1)."""
    n_sub = n_levels - base_level
    ks = jax.random.split(key, 6)
    return {
        "w_enc": 0.1 * jax.random.normal(ks[0], (n_sub, C_cond, C), jnp.float32),
        "b_enc": jnp.zeros((n_sub, C_cond, 1), jnp.float32),
        "w_proj": 0.1 * jax.random.normal(ks[1], (n_sub, 3 * C, C_cond), jnp.float32),
        "b_proj": jnp.zeros((n_sub, 3 * C, 1), jnp.float32),
        "logs": 0.05 * jax.random.normal(ks[2], (n_sub, 3 * C, 1), jnp.float32),
        "bias": 0.05 * jax.random.normal(ks[3], (n_sub, 3 * C, 1), jnp.float32),
        "base_logs": 0.05 * jax.random.normal(ks[4], (C, 1), jnp.float32),
        "base_bias": 0.05 * jax.random.normal(ks[5], (C, 1), jnp.float32),
    }


def _cost_estimate(B, C, C_cond, n_levels, base_level, haar_bytes, param_bytes):
    """Advisory CostEstimate so XLA schedules around the fused custom call."""
    flops = 0
    out_elems = 0
    for l in range(n_levels, base_level, -1):
        p_in = 4 ** l
        no = 4 ** (l - 1)
        flops += 2 * C * p_in * (4 * no)            # Haar combine matmul
        flops += 2 * C_cond * C * no                # encoder 1x1 conv
        flops += 2 * (3 * C) * C_cond * no          # projection 1x1 conv
        flops += 8 * (3 * C) * no                   # affine + bias adds
        out_elems += 3 * C * no
    base_sp = 4 ** base_level
    out_elems += C * base_sp + 1
    flops *= B
    transcendentals = B * ((n_levels - base_level) * 3 * C + C)     # exp()
    bytes_accessed = 4 * (B * C * (4 ** n_levels)       # input image
                          + haar_bytes // 4 + param_bytes // 4
                          + B * out_elems)               # latents + likelihood
    return pl.CostEstimate(flops=flops, transcendentals=transcendentals,
                           bytes_accessed=bytes_accessed)


def waveletflow_forward(params, x, n_levels, base_level):
    B, C, H, W = x.shape
    assert H == W == 2 ** n_levels, "image side must be 2**n_levels"
    n_sub = n_levels - base_level
    C3 = 3 * C
    base_sp = (2 ** base_level) ** 2

    x_flat = x.reshape(B, C, H * W)        # free reshape, NCHW preserved
    d_mats = [jnp.asarray(_haar_matrix(2 ** l, 2 ** l))
              for l in range(n_levels, base_level, -1)]

    def per_sample(shape):
        nd = len(shape)
        return pl.BlockSpec((None,) + tuple(shape[1:]),
                            lambda i, _nd=nd: (i,) + (0,) * (_nd - 1))

    def replicated(shape):
        # Constant index_map -> DMA'd once, VMEM-resident across the batch grid.
        nd = len(shape)
        return pl.BlockSpec(tuple(shape), lambda i, _nd=nd: (0,) * _nd)

    in_specs = [per_sample(x_flat.shape)]
    in_specs += [replicated(d.shape) for d in d_mats]
    in_specs += [replicated(params[k].shape) for k in _PARAM_ORDER]

    z_shapes = [(B, C3, (2 ** (l - 1)) ** 2)
                for l in range(n_levels, base_level, -1)]
    out_arrays = z_shapes + [(B, C, base_sp), (B, 1, 1)]
    out_shape = tuple(jax.ShapeDtypeStruct(s, jnp.float32) for s in out_arrays)
    out_specs = tuple(per_sample(s) for s in out_arrays)

    haar_bytes = sum(int(np.prod(d.shape)) * 4 for d in d_mats)
    param_bytes = sum(int(np.prod(params[k].shape)) * 4 for k in _PARAM_ORDER)

    kernel = functools.partial(_pyramid_kernel, n_levels=n_levels,
                               base_level=base_level)

    outs = pl.pallas_call(
        kernel,
        grid=(B,),
        in_specs=in_specs,
        out_specs=out_specs,
        out_shape=out_shape,
        compiler_params=pltpu.CompilerParams(
            dimension_semantics=("parallel",)),   # v7x: one sample per TensorCore
        cost_estimate=_cost_estimate(B, C, C_cond=params["w_enc"].shape[1],
                                     n_levels=n_levels, base_level=base_level,
                                     haar_bytes=haar_bytes,
                                     param_bytes=param_bytes),
    )(x_flat, *d_mats, *[params[k] for k in _PARAM_ORDER])

    z_flat, zb, ll = outs[:n_sub], outs[n_sub], outs[n_sub + 1]

    # free reshapes back to the PyTorch NCHW latent shapes
    latents = []
    for li in range(n_sub):
        hh = 2 ** (n_levels - 1 - li)
        latents.append(z_flat[li].reshape(B, C3, hh, hh))
    bs = 2 ** base_level
    latents.append(zb.reshape(B, C, bs, bs))
    return {"latent": latents, "likelihood": ll.reshape(B)}


if __name__ == "__main__":
    # Config mirroring the PyTorch module: imShape=(3,16,16), nLevels=4, baseLevel=0
    B, C, H, W = 2, 3, 16, 16
    n_levels, base_level, C_cond = 4, 0, 8

    key = jax.random.PRNGKey(0)
    k_x, k_p = jax.random.split(key)
    x = jax.random.normal(k_x, (B, C, H, W), jnp.float32)
    params = init_params(k_p, C, C_cond, n_levels, base_level)

    fwd = jax.jit(functools.partial(waveletflow_forward,
                                    n_levels=n_levels, base_level=base_level))
    out = fwd(params, x)
    jax.block_until_ready(out["likelihood"])
    for z in out["latent"]:
        jax.block_until_ready(z)

    assert out["likelihood"].shape == (B,)
    assert len(out["latent"]) == n_levels - base_level + 1
    assert out["latent"][0].shape == (B, 3 * C, H // 2, W // 2)
    assert out["latent"][-1].shape == (B, C, 1, 1)
    print("KERNEL_OK")
</pallas_src>

<mosaic_0001>
module attributes {stable_mosaic.version = 11 : i64} {
  func.func @_pyramid_kernel(%arg0: i32, %arg1: memref<1x3x256xf32, #tpu.memory_space<vmem>>, %arg2: memref<256x256xf32, #tpu.memory_space<vmem>>, %arg3: memref<64x64xf32, #tpu.memory_space<vmem>>, %arg4: memref<16x16xf32, #tpu.memory_space<vmem>>, %arg5: memref<4x4xf32, #tpu.memory_space<vmem>>, %arg6: memref<4x8x3xf32, #tpu.memory_space<vmem>>, %arg7: memref<4x8x1xf32, #tpu.memory_space<vmem>>, %arg8: memref<4x9x8xf32, #tpu.memory_space<vmem>>, %arg9: memref<4x9x1xf32, #tpu.memory_space<vmem>>, %arg10: memref<4x9x1xf32, #tpu.memory_space<vmem>>, %arg11: memref<4x9x1xf32, #tpu.memory_space<vmem>>, %arg12: memref<3x1xf32, #tpu.memory_space<vmem>>, %arg13: memref<3x1xf32, #tpu.memory_space<vmem>>, %arg14: memref<1x9x64xf32, #tpu.memory_space<vmem>>, %arg15: memref<1x9x16xf32, #tpu.memory_space<vmem>>, %arg16: memref<1x9x4xf32, #tpu.memory_space<vmem>>, %arg17: memref<1x9x1xf32, #tpu.memory_space<vmem>>, %arg18: memref<1x3x1xf32, #tpu.memory_space<vmem>>, %arg19: memref<1x1x1xf32, #tpu.memory_space<vmem>>) attributes {dimension_semantics = [#tpu.dimension_semantics<parallel>], iteration_bounds = array<i64: 2>, scalar_prefetch = 0 : i64, scratch_operands = 0 : i64, tpu.core_type = #tpu.core_type<tc>, window_params = [{transform_indices = @transform_0, window_bounds = array<i64: 1, 3, 256>}, {pipeline_mode = #tpu.pipeline_mode<synchronous>, transform_indices = @transform_1, window_bounds = array<i64: 256, 256>}, {pipeline_mode = #tpu.pipeline_mode<synchronous>, transform_indices = @transform_2, window_bounds = array<i64: 64, 64>}, {pipeline_mode = #tpu.pipeline_mode<synchronous>, transform_indices = @transform_3, window_bounds = array<i64: 16, 16>}, {pipeline_mode = #tpu.pipeline_mode<synchronous>, transform_indices = @transform_4, window_bounds = array<i64: 4, 4>}, {pipeline_mode = #tpu.pipeline_mode<synchronous>, transform_indices = @transform_5, window_bounds = array<i64: 4, 8, 3>}, {pipeline_mode = #tpu.pipeline_mode<synchronous>, transform_indices = @transform_6, window_bounds = array<i64: 4, 8, 1>}, {pipeline_mode = #tpu.pipeline_mode<synchronous>, transform_indices = @transform_7, window_bounds = array<i64: 4, 9, 8>}, {pipeline_mode = #tpu.pipeline_mode<synchronous>, transform_indices = @transform_8, window_bounds = array<i64: 4, 9, 1>}, {pipeline_mode = #tpu.pipeline_mode<synchronous>, transform_indices = @transform_9, window_bounds = array<i64: 4, 9, 1>}, {pipeline_mode = #tpu.pipeline_mode<synchronous>, transform_indices = @transform_10, window_bounds = array<i64: 4, 9, 1>}, {pipeline_mode = #tpu.pipeline_mode<synchronous>, transform_indices = @transform_11, window_bounds = array<i64: 3, 1>}, {pipeline_mode = #tpu.pipeline_mode<synchronous>, transform_indices = @transform_12, window_bounds = array<i64: 3, 1>}, {transform_indices = @transform_13, window_bounds = array<i64: 1, 9, 64>}, {transform_indices = @transform_14, window_bounds = array<i64: 1, 9, 16>}, {transform_indices = @transform_15, window_bounds = array<i64: 1, 9, 4>}, {transform_indices = @transform_16, window_bounds = array<i64: 1, 9, 1>}, {transform_indices = @transform_17, window_bounds = array<i64: 1, 3, 1>}, {transform_indices = @transform_18, window_bounds = array<i64: 1, 1, 1>}]} {
    %c0 = arith.constant 0 : index
    %c0_0 = arith.constant 0 : index
    %c0_1 = arith.constant 0 : index
    %0 = vector.load %arg1[%c0, %c0_0, %c0_1] : memref<1x3x256xf32, #tpu.memory_space<vmem>>, vector<1x3x256xf32>
    %1 = vector.shape_cast %0 : vector<1x3x256xf32> to vector<3x256xf32>
    %c0_2 = arith.constant 0 : index
    %c0_3 = arith.constant 0 : index
    %2 = vector.load %arg2[%c0_2, %c0_3] : memref<256x256xf32, #tpu.memory_space<vmem>>, vector<256x256xf32>
    %cst = arith.constant dense<0.000000e+00> : vector<3x256xf32>
    %3 = tpu.matmul %1, %2, %cst {dimension_numbers = #tpu.dot_dimension_numbers<[1], [0], [0], [1], [0, 0, 1, 1], [], []>} : vector<3x256xf32>, vector<256x256xf32>, vector<3x256xf32> -> vector<3x256xf32>
    %4 = vector.extract_strided_slice %3 {offsets = [0, 0], sizes = [3, 64], strides = [1, 1]} : vector<3x256xf32> to vector<3x64xf32>
    %5 = vector.extract_strided_slice %3 {offsets = [0, 64], sizes = [3, 64], strides = [1, 1]} : vector<3x256xf32> to vector<3x64xf32>
    %6 = vector.extract_strided_slice %3 {offsets = [0, 128], sizes = [3, 64], strides = [1, 1]} : vector<3x256xf32> to vector<3x64xf32>
    %7 = vector.extract_strided_slice %3 {offsets = [0, 192], sizes = [3, 64], strides = [1, 1]} : vector<3x256xf32> to vector<3x64xf32>
    %8 = tpu.concatenate %5, %6, %7 in 0 : vector<3x64xf32>, vector<3x64xf32>, vector<3x64xf32> -> vector<9x64xf32>
    %c0_4 = arith.constant 0 : index
    %c0_5 = arith.constant 0 : index
    %c0_6 = arith.constant 0 : index
    %9 = vector.load %arg6[%c0_4, %c0_5, %c0_6] : memref<4x8x3xf32, #tpu.memory_space<vmem>>, vector<1x8x3xf32>
    %10 = vector.shape_cast %9 : vector<1x8x3xf32> to vector<8x3xf32>
    %cst_7 = arith.constant dense<0.000000e+00> : vector<8x64xf32>
    %11 = tpu.matmul %10, %4, %cst_7 {dimension_numbers = #tpu.dot_dimension_numbers<[1], [0], [0], [1], [0, 0, 1, 1], [], []>} : vector<8x3xf32>, vector<3x64xf32>, vector<8x64xf32> -> vector<8x64xf32>
    %c0_8 = arith.constant 0 : index
    %c0_9 = arith.constant 0 : index
    %c0_10 = arith.constant 0 : index
    %12 = vector.load %arg7[%c0_8, %c0_9, %c0_10] : memref<4x8x1xf32, #tpu.memory_space<vmem>>, vector<1x8x1xf32>
    %13 = vector.shape_cast %12 : vector<1x8x1xf32> to vector<8x1xf32>
    %14 = vector.broadcast %13 : vector<8x1xf32> to vector<8x64xf32>
    %15 = arith.addf %11, %14 : vector<8x64xf32>
    %cst_11 = arith.constant 0.000000e+00 : f32
    %16 = vector.broadcast %cst_11 : f32 to vector<8x64xf32>
    %17 = arith.maximumf %15, %16 : vector<8x64xf32>
    %c0_12 = arith.constant 0 : index
    %c0_13 = arith.constant 0 : index
    %c0_14 = arith.constant 0 : index
    %18 = vector.load %arg8[%c0_12, %c0_13, %c0_14] : memref<4x9x8xf32, #tpu.memory_space<vmem>>, vector<1x9x8xf32>
    %19 = vector.shape_cast %18 : vector<1x9x8xf32> to vector<9x8xf32>
    %cst_15 = arith.constant dense<0.000000e+00> : vector<9x64xf32>
    %20 = tpu.matmul %19, %17, %cst_15 {dimension_numbers = #tpu.dot_dimension_numbers<[1], [0], [0], [1], [0, 0, 1, 1], [], []>} : vector<9x8xf32>, vector<8x64xf32>, vector<9x64xf32> -> vector<9x64xf32>
    %c0_16 = arith.constant 0 : index
    %c0_17 = arith.constant 0 : index
    %c0_18 = arith.constant 0 : index
    %21 = vector.load %arg9[%c0_16, %c0_17, %c0_18] : memref<4x9x1xf32, #tpu.memory_space<vmem>>, vector<1x9x1xf32>
    %22 = vector.shape_cast %21 : vector<1x9x1xf32> to vector<9x1xf32>
    %23 = vector.broadcast %22 : vector<9x1xf32> to vector<9x64xf32>
    %24 = arith.addf %20, %23 : vector<9x64xf32>
    %c0_19 = arith.constant 0 : index
    %c0_20 = arith.constant 0 : index
    %c0_21 = arith.constant 0 : index
    %25 = vector.load %arg10[%c0_19, %c0_20, %c0_21] : memref<4x9x1xf32, #tpu.memory_space<vmem>>, vector<1x9x1xf32>
    %26 = vector.shape_cast %25 : vector<1x9x1xf32> to vector<9x1xf32>
    %27 = math.exp %26 : vector<9x1xf32>
    %28 = vector.broadcast %27 : vector<9x1xf32> to vector<9x64xf32>
    %29 = arith.mulf %8, %28 : vector<9x64xf32>
    %c0_22 = arith.constant 0 : index
    %c0_23 = arith.constant 0 : index
    %c0_24 = arith.constant 0 : index
    %30 = vector.load %arg11[%c0_22, %c0_23, %c0_24] : memref<4x9x1xf32, #tpu.memory_space<vmem>>, vector<1x9x1xf32>
    %31 = vector.shape_cast %30 : vector<1x9x1xf32> to vector<9x1xf32>
    %32 = vector.broadcast %31 : vector<9x1xf32> to vector<9x64xf32>
    %33 = arith.addf %29, %32 : vector<9x64xf32>
    %34 = arith.addf %33, %24 : vector<9x64xf32>
    %c0_25 = arith.constant 0 : index
    %c0_26 = arith.constant 0 : index
    %c0_27 = arith.constant 0 : index
    %35 = vector.load %arg14[%c0_25, %c0_26, %c0_27] : memref<1x9x64xf32, #tpu.memory_space<vmem>>, vector<1x9x64xf32>
    %36 = vector.shape_cast %35 : vector<1x9x64xf32> to vector<9x64xf32>
    %37 = vector.shape_cast %34 : vector<9x64xf32> to vector<1x9x64xf32>
    tpu.vector_store %arg14[%c0_25, %c0_26, %c0_27], %37 {strides = array<i32>} : memref<1x9x64xf32, #tpu.memory_space<vmem>>, vector<1x9x64xf32>,
    %c0_28 = arith.constant 0 : index
    %c0_29 = arith.constant 0 : index
    %38 = vector.load %arg3[%c0_28, %c0_29] : memref<64x64xf32, #tpu.memory_space<vmem>>, vector<64x64xf32>
    %cst_30 = arith.constant dense<0.000000e+00> : vector<3x64xf32>
    %39 = tpu.matmul %4, %38, %cst_30 {dimension_numbers = #tpu.dot_dimension_numbers<[1], [0], [0], [1], [0, 0, 1, 1], [], []>} : vector<3x64xf32>, vector<64x64xf32>, vector<3x64xf32> -> vector<3x64xf32>
    %40 = vector.extract_strided_slice %39 {offsets = [0, 0], sizes = [3, 16], strides = [1, 1]} : vector<3x64xf32> to vector<3x16xf32>
    %41 = vector.extract_strided_slice %39 {offsets = [0, 16], sizes = [3, 16], strides = [1, 1]} : vector<3x64xf32> to vector<3x16xf32>
    %42 = vector.extract_strided_slice %39 {offsets = [0, 32], sizes = [3, 16], strides = [1, 1]} : vector<3x64xf32> to vector<3x16xf32>
    %43 = vector.extract_strided_slice %39 {offsets = [0, 48], sizes = [3, 16], strides = [1, 1]} : vector<3x64xf32> to vector<3x16xf32>
    %44 = tpu.concatenate %41, %42, %43 in 0 : vector<3x16xf32>, vector<3x16xf32>, vector<3x16xf32> -> vector<9x16xf32>
    %c1 = arith.constant 1 : index
    %c0_31 = arith.constant 0 : index
    %c0_32 = arith.constant 0 : index
    %45 = vector.load %arg6[%c1, %c0_31, %c0_32] : memref<4x8x3xf32, #tpu.memory_space<vmem>>, vector<1x8x3xf32>
    %46 = vector.shape_cast %45 : vector<1x8x3xf32> to vector<8x3xf32>
    %cst_33 = arith.constant dense<0.000000e+00> : vector<8x16xf32>
    %47 = tpu.matmul %46, %40, %cst_33 {dimension_numbers = #tpu.dot_dimension_numbers<[1], [0], [0], [1], [0, 0, 1, 1], [], []>} : vector<8x3xf32>, vector<3x16xf32>, vector<8x16xf32> -> vector<8x16xf32>
    %c1_34 = arith.constant 1 : index
    %c0_35 = arith.constant 0 : index
    %c0_36 = arith.constant 0 : index
    %48 = vector.load %arg7[%c1_34, %c0_35, %c0_36] : memref<4x8x1xf32, #tpu.memory_space<vmem>>, vector<1x8x1xf32>
    %49 = vector.shape_cast %48 : vector<1x8x1xf32> to vector<8x1xf32>
    %50 = vector.broadcast %49 : vector<8x1xf32> to vector<8x16xf32>
    %51 = arith.addf %47, %50 : vector<8x16xf32>
    %cst_37 = arith.constant 0.000000e+00 : f32
    %52 = vector.broadcast %cst_37 : f32 to vector<8x16xf32>
    %53 = arith.maximumf %51, %52 : vector<8x16xf32>
    %c1_38 = arith.constant 1 : index
    %c0_39 = arith.constant 0 : index
    %c0_40 = arith.constant 0 : index
    %54 = vector.load %arg8[%c1_38, %c0_39, %c0_40] : memref<4x9x8xf32, #tpu.memory_space<vmem>>, vector<1x9x8xf32>
    %55 = vector.shape_cast %54 : vector<1x9x8xf32> to vector<9x8xf32>
    %cst_41 = arith.constant dense<0.000000e+00> : vector<9x16xf32>
    %56 = tpu.matmul %55, %53, %cst_41 {dimension_numbers = #tpu.dot_dimension_numbers<[1], [0], [0], [1], [0, 0, 1, 1], [], []>} : vector<9x8xf32>, vector<8x16xf32>, vector<9x16xf32> -> vector<9x16xf32>
    %c1_42 = arith.constant 1 : index
    %c0_43 = arith.constant 0 : index
    %c0_44 = arith.constant 0 : index
    %57 = vector.load %arg9[%c1_42, %c0_43, %c0_44] : memref<4x9x1xf32, #tpu.memory_space<vmem>>, vector<1x9x1xf32>
    %58 = vector.shape_cast %57 : vector<1x9x1xf32> to vector<9x1xf32>
    %59 = vector.broadcast %58 : vector<9x1xf32> to vector<9x16xf32>
    %60 = arith.addf %56, %59 : vector<9x16xf32>
    %c1_45 = arith.constant 1 : index
    %c0_46 = arith.constant 0 : index
    %c0_47 = arith.constant 0 : index
    %61 = vector.load %arg10[%c1_45, %c0_46, %c0_47] : memref<4x9x1xf32, #tpu.memory_space<vmem>>, vector<1x9x1xf32>
    %62 = vector.shape_cast %61 : vector<1x9x1xf32> to vector<9x1xf32>
    %63 = math.exp %62 : vector<9x1xf32>
    %64 = vector.broadcast %63 : vector<9x1xf32> to vector<9x16xf32>
    %65 = arith.mulf %44, %64 : vector<9x16xf32>
    %c1_48 = arith.constant 1 : index
    %c0_49 = arith.constant 0 : index
    %c0_50 = arith.constant 0 : index
    %66 = vector.load %arg11[%c1_48, %c0_49, %c0_50] : memref<4x9x1xf32, #tpu.memory_space<vmem>>, vector<1x9x1xf32>
    %67 = vector.shape_cast %66 : vector<1x9x1xf32> to vector<9x1xf32>
    %68 = vector.broadcast %67 : vector<9x1xf32> to vector<9x16xf32>
    %69 = arith.addf %65, %68 : vector<9x16xf32>
    %70 = arith.addf %69, %60 : vector<9x16xf32>
    %c0_51 = arith.constant 0 : index
    %c0_52 = arith.constant 0 : index
    %c0_53 = arith.constant 0 : index
    %71 = vector.load %arg15[%c0_51, %c0_52, %c0_53] : memref<1x9x16xf32, #tpu.memory_space<vmem>>, vector<1x9x16xf32>
    %72 = vector.shape_cast %71 : vector<1x9x16xf32> to vector<9x16xf32>
    %73 = vector.shape_cast %70 : vector<9x16xf32> to vector<1x9x16xf32>
    tpu.vector_store %arg15[%c0_51, %c0_52, %c0_53], %73 {strides = array<i32>} : memref<1x9x16xf32, #tpu.memory_space<vmem>>, vector<1x9x16xf32>,
    %c0_54 = arith.constant 0 : index
    %c0_55 = arith.constant 0 : index
    %74 = vector.load %arg4[%c0_54, %c0_55] : memref<16x16xf32, #tpu.memory_space<vmem>>, vector<16x16xf32>
    %cst_56 = arith.constant dense<0.000000e+00> : vector<3x16xf32>
    %75 = tpu.matmul %40, %74, %cst_56 {dimension_numbers = #tpu.dot_dimension_numbers<[1], [0], [0], [1], [0, 0, 1, 1], [], []>} : vector<3x16xf32>, vector<16x16xf32>, vector<3x16xf32> -> vector<3x16xf32>
    %76 = vector.extract_strided_slice %75 {offsets = [0, 0], sizes = [3, 4], strides = [1, 1]} : vector<3x16xf32> to vector<3x4xf32>
    %77 = vector.extract_strided_slice %75 {offsets = [0, 4], sizes = [3, 4], strides = [1, 1]} : vector<3x16xf32> to vector<3x4xf32>
    %78 = vector.extract_strided_slice %75 {offsets = [0, 8], sizes = [3, 4], strides = [1, 1]} : vector<3x16xf32> to vector<3x4xf32>
    %79 = vector.extract_strided_slice %75 {offsets = [0, 12], sizes = [3, 4], strides = [1, 1]} : vector<3x16xf32> to vector<3x4xf32>
    %80 = tpu.concatenate %77, %78, %79 in 0 : vector<3x4xf32>, vector<3x4xf32>, vector<3x4xf32> -> vector<9x4xf32>
    %c2 = arith.constant 2 : index
    %c0_57 = arith.constant 0 : index
    %c0_58 = arith.constant 0 : index
    %81 = vector.load %arg6[%c2, %c0_57, %c0_58] : memref<4x8x3xf32, #tpu.memory_space<vmem>>, vector<1x8x3xf32>
    %82 = vector.shape_cast %81 : vector<1x8x3xf32> to vector<8x3xf32>
    %cst_59 = arith.constant dense<0.000000e+00> : vector<8x4xf32>
    %83 = tpu.matmul %82, %76, %cst_59 {dimension_numbers = #tpu.dot_dimension_numbers<[1], [0], [0], [1], [0, 0, 1, 1], [], []>} : vector<8x3xf32>, vector<3x4xf32>, vector<8x4xf32> -> vector<8x4xf32>
    %c2_60 = arith.constant 2 : index
    %c0_61 = arith.constant 0 : index
    %c0_62 = arith.constant 0 : index
    %84 = vector.load %arg7[%c2_60, %c0_61, %c0_62] : memref<4x8x1xf32, #tpu.memory_space<vmem>>, vector<1x8x1xf32>
    %85 = vector.shape_cast %84 : vector<1x8x1xf32> to vector<8x1xf32>
    %86 = vector.broadcast %85 : vector<8x1xf32> to vector<8x4xf32>
    %87 = arith.addf %83, %86 : vector<8x4xf32>
    %cst_63 = arith.constant 0.000000e+00 : f32
    %88 = vector.broadcast %cst_63 : f32 to vector<8x4xf32>
    %89 = arith.maximumf %87, %88 : vector<8x4xf32>
    %c2_64 = arith.constant 2 : index
    %c0_65 = arith.constant 0 : index
    %c0_66 = arith.constant 0 : index
    %90 = vector.load %arg8[%c2_64, %c0_65, %c0_66] : memref<4x9x8xf32, #tpu.memory_space<vmem>>, vector<1x9x8xf32>
    %91 = vector.shape_cast %90 : vector<1x9x8xf32> to vector<9x8xf32>
    %cst_67 = arith.constant dense<0.000000e+00> : vector<9x4xf32>
    %92 = tpu.matmul %91, %89, %cst_67 {dimension_numbers = #tpu.dot_dimension_numbers<[1], [0], [0], [1], [0, 0, 1, 1], [], []>} : vector<9x8xf32>, vector<8x4xf32>, vector<9x4xf32> -> vector<9x4xf32>
    %c2_68 = arith.constant 2 : index
    %c0_69 = arith.constant 0 : index
    %c0_70 = arith.constant 0 : index
    %93 = vector.load %arg9[%c2_68, %c0_69, %c0_70] : memref<4x9x1xf32, #tpu.memory_space<vmem>>, vector<1x9x1xf32>
    %94 = vector.shape_cast %93 : vector<1x9x1xf32> to vector<9x1xf32>
    %95 = vector.broadcast %94 : vector<9x1xf32> to vector<9x4xf32>
    %96 = arith.addf %92, %95 : vector<9x4xf32>
    %c2_71 = arith.constant 2 : index
    %c0_72 = arith.constant 0 : index
    %c0_73 = arith.constant 0 : index
    %97 = vector.load %arg10[%c2_71, %c0_72, %c0_73] : memref<4x9x1xf32, #tpu.memory_space<vmem>>, vector<1x9x1xf32>
    %98 = vector.shape_cast %97 : vector<1x9x1xf32> to vector<9x1xf32>
    %99 = math.exp %98 : vector<9x1xf32>
    %100 = vector.broadcast %99 : vector<9x1xf32> to vector<9x4xf32>
    %101 = arith.mulf %80, %100 : vector<9x4xf32>
    %c2_74 = arith.constant 2 : index
    %c0_75 = arith.constant 0 : index
    %c0_76 = arith.constant 0 : index
    %102 = vector.load %arg11[%c2_74, %c0_75, %c0_76] : memref<4x9x1xf32, #tpu.memory_space<vmem>>, vector<1x9x1xf32>
    %103 = vector.shape_cast %102 : vector<1x9x1xf32> to vector<9x1xf32>
    %104 = vector.broadcast %103 : vector<9x1xf32> to vector<9x4xf32>
    %105 = arith.addf %101, %104 : vector<9x4xf32>
    %106 = arith.addf %105, %96 : vector<9x4xf32>
    %c0_77 = arith.constant 0 : index
    %c0_78 = arith.constant 0 : index
    %c0_79 = arith.constant 0 : index
    %107 = vector.load %arg16[%c0_77, %c0_78, %c0_79] : memref<1x9x4xf32, #tpu.memory_space<vmem>>, vector<1x9x4xf32>
    %108 = vector.shape_cast %107 : vector<1x9x4xf32> to vector<9x4xf32>
    %109 = vector.shape_cast %106 : vector<9x4xf32> to vector<1x9x4xf32>
    tpu.vector_store %arg16[%c0_77, %c0_78, %c0_79], %109 {strides = array<i32>} : memref<1x9x4xf32, #tpu.memory_space<vmem>>, vector<1x9x4xf32>,
    %c0_80 = arith.constant 0 : index
    %c0_81 = arith.constant 0 : index
    %110 = vector.load %arg5[%c0_80, %c0_81] : memref<4x4xf32, #tpu.memory_space<vmem>>, vector<4x4xf32>
    %cst_82 = arith.constant dense<0.000000e+00> : vector<3x4xf32>
    %111 = tpu.matmul %76, %110, %cst_82 {dimension_numbers = #tpu.dot_dimension_numbers<[1], [0], [0], [1], [0, 0, 1, 1], [], []>} : vector<3x4xf32>, vector<4x4xf32>, vector<3x4xf32> -> vector<3x4xf32>
    %112 = vector.extract_strided_slice %111 {offsets = [0, 0], sizes = [3, 1], strides = [1, 1]} : vector<3x4xf32> to vector<3x1xf32>
    %113 = vector.extract_strided_slice %111 {offsets = [0, 1], sizes = [3, 1], strides = [1, 1]} : vector<3x4xf32> to vector<3x1xf32>
    %114 = vector.extract_strided_slice %111 {offsets = [0, 2], sizes = [3, 1], strides = [1, 1]} : vector<3x4xf32> to vector<3x1xf32>
    %115 = vector.extract_strided_slice %111 {offsets = [0, 3], sizes = [3, 1], strides = [1, 1]} : vector<3x4xf32> to vector<3x1xf32>
    %116 = tpu.concatenate %113, %114, %115 in 0 : vector<3x1xf32>, vector<3x1xf32>, vector<3x1xf32> -> vector<9x1xf32>
    %c3 = arith.constant 3 : index
    %c0_83 = arith.constant 0 : index
    %c0_84 = arith.constant 0 : index
    %117 = vector.load %arg6[%c3, %c0_83, %c0_84] : memref<4x8x3xf32, #tpu.memory_space<vmem>>, vector<1x8x3xf32>
    %118 = vector.shape_cast %117 : vector<1x8x3xf32> to vector<8x3xf32>
    %cst_85 = arith.constant dense<0.000000e+00> : vector<8x1xf32>
    %119 = tpu.matmul %118, %112, %cst_85 {dimension_numbers = #tpu.dot_dimension_numbers<[1], [0], [0], [1], [0, 0, 1, 1], [], []>} : vector<8x3xf32>, vector<3x1xf32>, vector<8x1xf32> -> vector<8x1xf32>
    %c3_86 = arith.constant 3 : index
    %c0_87 = arith.constant 0 : index
    %c0_88 = arith.constant 0 : index
    %120 = vector.load %arg7[%c3_86, %c0_87, %c0_88] : memref<4x8x1xf32, #tpu.memory_space<vmem>>, vector<1x8x1xf32>
    %121 = vector.shape_cast %120 : vector<1x8x1xf32> to vector<8x1xf32>
    %122 = arith.addf %119, %121 : vector<8x1xf32>
    %cst_89 = arith.constant 0.000000e+00 : f32
    %123 = vector.broadcast %cst_89 : f32 to vector<8x1xf32>
    %124 = arith.maximumf %122, %123 : vector<8x1xf32>
    %c3_90 = arith.constant 3 : index
    %c0_91 = arith.constant 0 : index
    %c0_92 = arith.constant 0 : index
    %125 = vector.load %arg8[%c3_90, %c0_91, %c0_92] : memref<4x9x8xf32, #tpu.memory_space<vmem>>, vector<1x9x8xf32>
    %126 = vector.shape_cast %125 : vector<1x9x8xf32> to vector<9x8xf32>
    %cst_93 = arith.constant dense<0.000000e+00> : vector<9x1xf32>
    %127 = tpu.matmul %126, %124, %cst_93 {dimension_numbers = #tpu.dot_dimension_numbers<[1], [0], [0], [1], [0, 0, 1, 1], [], []>} : vector<9x8xf32>, vector<8x1xf32>, vector<9x1xf32> -> vector<9x1xf32>
    %c3_94 = arith.constant 3 : index
    %c0_95 = arith.constant 0 : index
    %c0_96 = arith.constant 0 : index
    %128 = vector.load %arg9[%c3_94, %c0_95, %c0_96] : memref<4x9x1xf32, #tpu.memory_space<vmem>>, vector<1x9x1xf32>
    %129 = vector.shape_cast %128 : vector<1x9x1xf32> to vector<9x1xf32>
    %130 = arith.addf %127, %129 : vector<9x1xf32>
    %c3_97 = arith.constant 3 : index
    %c0_98 = arith.constant 0 : index
    %c0_99 = arith.constant 0 : index
    %131 = vector.load %arg10[%c3_97, %c0_98, %c0_99] : memref<4x9x1xf32, #tpu.memory_space<vmem>>, vector<1x9x1xf32>
    %132 = vector.shape_cast %131 : vector<1x9x1xf32> to vector<9x1xf32>
    %133 = math.exp %132 : vector<9x1xf32>
    %134 = arith.mulf %116, %133 : vector<9x1xf32>
    %c3_100 = arith.constant 3 : index
    %c0_101 = arith.constant 0 : index
    %c0_102 = arith.constant 0 : index
    %135 = vector.load %arg11[%c3_100, %c0_101, %c0_102] : memref<4x9x1xf32, #tpu.memory_space<vmem>>, vector<1x9x1xf32>
    %136 = vector.shape_cast %135 : vector<1x9x1xf32> to vector<9x1xf32>
    %137 = arith.addf %134, %136 : vector<9x1xf32>
    %138 = arith.addf %137, %130 : vector<9x1xf32>
    %c0_103 = arith.constant 0 : index
    %c0_104 = arith.constant 0 : index
    %c0_105 = arith.constant 0 : index
    %139 = vector.load %arg17[%c0_103, %c0_104, %c0_105] : memref<1x9x1xf32, #tpu.memory_space<vmem>>, vector<1x9x1xf32>
    %140 = vector.shape_cast %139 : vector<1x9x1xf32> to vector<9x1xf32>
    %141 = vector.shape_cast %138 : vector<9x1xf32> to vector<1x9x1xf32>
    tpu.vector_store %arg17[%c0_103, %c0_104, %c0_105], %141 {strides = array<i32>} : memref<1x9x1xf32, #tpu.memory_space<vmem>>, vector<1x9x1xf32>,
    %c0_106 = arith.constant 0 : index
    %c0_107 = arith.constant 0 : index
    %142 = vector.load %arg12[%c0_106, %c0_107] : memref<3x1xf32, #tpu.memory_space<vmem>>, vector<3x1xf32>
    %143 = math.exp %142 : vector<3x1xf32>
    %144 = arith.mulf %112, %143 : vector<3x1xf32>
    %c0_108 = arith.constant 0 : index
    %c0_109 = arith.constant 0 : index
    %145 = vector.load %arg13[%c0_108, %c0_109] : memref<3x1xf32, #tpu.memory_space<vmem>>, vector<3x1xf32>
    %146 = arith.addf %144, %145 : vector<3x1xf32>
    %c0_110 = arith.constant 0 : index
    %c0_111 = arith.constant 0 : index
    %c0_112 = arith.constant 0 : index
    %147 = vector.load %arg18[%c0_110, %c0_111, %c0_112] : memref<1x3x1xf32, #tpu.memory_space<vmem>>, vector<1x3x1xf32>
    %148 = vector.shape_cast %147 : vector<1x3x1xf32> to vector<3x1xf32>
    %149 = vector.shape_cast %146 : vector<3x1xf32> to vector<1x3x1xf32>
    tpu.vector_store %arg18[%c0_110, %c0_111, %c0_112], %149 {strides = array<i32>} : memref<1x3x1xf32, #tpu.memory_space<vmem>>, vector<1x3x1xf32>,
    %150 = vector.shape_cast %142 : vector<3x1xf32> to vector<1x3x1xf32>
    %cst_113 = arith.constant dense<0.000000e+00> : vector<1xf32>
    %151 = vector.multi_reduction <add>, %150, %cst_113 [1, 2] : vector<1x3x1xf32> to vector<1xf32>
    %152 = vector.shape_cast %151 : vector<1xf32> to vector<1x1x1xf32>
    %153 = vector.extract %152[0, 0, 0] : f32 from vector<1x1x1xf32>
    %154 = vector.broadcast %153 : f32 to vector<1x1xf32>
    %cst_114 = arith.constant 1.000000e+00 : f32
    %155 = vector.broadcast %cst_114 : f32 to vector<1x1xf32>
    %156 = arith.mulf %155, %154 : vector<1x1xf32>
    %157 = arith.mulf %146, %146 : vector<3x1xf32>
    %158 = vector.shape_cast %157 : vector<3x1xf32> to vector<1x3x1xf32>
    %cst_115 = arith.constant dense<0.000000e+00> : vector<1xf32>
    %159 = vector.multi_reduction <add>, %158, %cst_115 [1, 2] : vector<1x3x1xf32> to vector<1xf32>
    %160 = vector.shape_cast %159 : vector<1xf32> to vector<1x1x1xf32>
    %161 = vector.extract %160[0, 0, 0] : f32 from vector<1x1x1xf32>
    %162 = vector.broadcast %161 : f32 to vector<1x1xf32>
    %cst_116 = arith.constant 5.51363134 : f32
    %163 = vector.broadcast %cst_116 : f32 to vector<1x1xf32>
    %164 = arith.addf %162, %163 : vector<1x1xf32>
    %cst_117 = arith.constant -5.000000e-01 : f32
    %165 = vector.broadcast %cst_117 : f32 to vector<1x1xf32>
    %166 = arith.mulf %165, %164 : vector<1x1xf32>
    %167 = arith.addf %166, %156 : vector<1x1xf32>
    %cst_118 = arith.constant 0.000000e+00 : f32
    %168 = vector.broadcast %cst_118 : f32 to vector<1x1xf32>
    %169 = arith.subf %168, %167 : vector<1x1xf32>
    %cst_119 = arith.constant 0.48089835 : f32
    %170 = vector.broadcast %cst_119 : f32 to vector<1x1xf32>
    %171 = arith.mulf %169, %170 : vector<1x1xf32>
    %cst_120 = arith.constant 4.000000e+00 : f32
    %172 = vector.broadcast %cst_120 : f32 to vector<1x1xf32>
    %173 = arith.addf %171, %172 : vector<1x1xf32>
    %c0_121 = arith.constant 0 : index
    %c0_122 = arith.constant 0 : index
    %c0_123 = arith.constant 0 : index
    %174 = vector.load %arg19[%c0_121, %c0_122, %c0_123] : memref<1x1x1xf32, #tpu.memory_space<vmem>>, vector<1x1x1xf32>
    %175 = vector.shape_cast %174 : vector<1x1x1xf32> to vector<1x1xf32>
    %176 = vector.shape_cast %173 : vector<1x1xf32> to vector<1x1x1xf32>
    tpu.vector_store %arg19[%c0_121, %c0_122, %c0_123], %176 {strides = array<i32>} : memref<1x1x1xf32, #tpu.memory_space<vmem>>, vector<1x1x1xf32>,
    return
  }
  func.func @transform_0(%arg0: i32) -> (i32, i32, i32) {
    %c0_i32 = arith.constant 0 : i32
    %c0_i32_0 = arith.constant 0 : i32
    %c0_i32_1 = arith.constant 0 : i32
    return %arg0, %c0_i32, %c0_i32_0 : i32, i32, i32
  }
  func.func @transform_1(%arg0: i32) -> (i32, i32) {
    %c0_i32 = arith.constant 0 : i32
    %c0_i32_0 = arith.constant 0 : i32
    %c0_i32_1 = arith.constant 0 : i32
    return %c0_i32, %c0_i32_0 : i32, i32
  }
  func.func @transform_2(%arg0: i32) -> (i32, i32) {
    %c0_i32 = arith.constant 0 : i32
    %c0_i32_0 = arith.constant 0 : i32
    %c0_i32_1 = arith.constant 0 : i32
    return %c0_i32, %c0_i32_0 : i32, i32
  }
  func.func @transform_3(%arg0: i32) -> (i32, i32) {
    %c0_i32 = arith.constant 0 : i32
    %c0_i32_0 = arith.constant 0 : i32
    %c0_i32_1 = arith.constant 0 : i32
    return %c0_i32, %c0_i32_0 : i32, i32
  }
  func.func @transform_4(%arg0: i32) -> (i32, i32) {
    %c0_i32 = arith.constant 0 : i32
    %c0_i32_0 = arith.constant 0 : i32
    %c0_i32_1 = arith.constant 0 : i32
    return %c0_i32, %c0_i32_0 : i32, i32
  }
  func.func @transform_5(%arg0: i32) -> (i32, i32, i32) {
    %c0_i32 = arith.constant 0 : i32
    %c0_i32_0 = arith.constant 0 : i32
    %c0_i32_1 = arith.constant 0 : i32
    %c0_i32_2 = arith.constant 0 : i32
    return %c0_i32, %c0_i32_0, %c0_i32_1 : i32, i32, i32
  }
  func.func @transform_6(%arg0: i32) -> (i32, i32, i32) {
    %c0_i32 = arith.constant 0 : i32
    %c0_i32_0 = arith.constant 0 : i32
    %c0_i32_1 = arith.constant 0 : i32
    %c0_i32_2 = arith.constant 0 : i32
    return %c0_i32, %c0_i32_0, %c0_i32_1 : i32, i32, i32
  }
  func.func @transform_7(%arg0: i32) -> (i32, i32, i32) {
    %c0_i32 = arith.constant 0 : i32
    %c0_i32_0 = arith.constant 0 : i32
    %c0_i32_1 = arith.constant 0 : i32
    %c0_i32_2 = arith.constant 0 : i32
    return %c0_i32, %c0_i32_0, %c0_i32_1 : i32, i32, i32
  }
  func.func @transform_8(%arg0: i32) -> (i32, i32, i32) {
    %c0_i32 = arith.constant 0 : i32
    %c0_i32_0 = arith.constant 0 : i32
    %c0_i32_1 = arith.constant 0 : i32
    %c0_i32_2 = arith.constant 0 : i32
    return %c0_i32, %c0_i32_0, %c0_i32_1 : i32, i32, i32
  }
  func.func @transform_9(%arg0: i32) -> (i32, i32, i32) {
    %c0_i32 = arith.constant 0 : i32
    %c0_i32_0 = arith.constant 0 : i32
    %c0_i32_1 = arith.constant 0 : i32
    %c0_i32_2 = arith.constant 0 : i32
    return %c0_i32, %c0_i32_0, %c0_i32_1 : i32, i32, i32
  }
  func.func @transform_10(%arg0: i32) -> (i32, i32, i32) {
    %c0_i32 = arith.constant 0 : i32
    %c0_i32_0 = arith.constant 0 : i32
    %c0_i32_1 = arith.constant 0 : i32
    %c0_i32_2 = arith.constant 0 : i32
    return %c0_i32, %c0_i32_0, %c0_i32_1 : i32, i32, i32
  }
  func.func @transform_11(%arg0: i32) -> (i32, i32) {
    %c0_i32 = arith.constant 0 : i32
    %c0_i32_0 = arith.constant 0 : i32
    %c0_i32_1 = arith.constant 0 : i32
    return %c0_i32, %c0_i32_0 : i32, i32
  }
  func.func @transform_12(%arg0: i32) -> (i32, i32) {
    %c0_i32 = arith.constant 0 : i32
    %c0_i32_0 = arith.constant 0 : i32
    %c0_i32_1 = arith.constant 0 : i32
    return %c0_i32, %c0_i32_0 : i32, i32
  }
  func.func @transform_13(%arg0: i32) -> (i32, i32, i32) {
    %c0_i32 = arith.constant 0 : i32
    %c0_i32_0 = arith.constant 0 : i32
    %c0_i32_1 = arith.constant 0 : i32
    return %arg0, %c0_i32, %c0_i32_0 : i32, i32, i32
  }
  func.func @transform_14(%arg0: i32) -> (i32, i32, i32) {
    %c0_i32 = arith.constant 0 : i32
    %c0_i32_0 = arith.constant 0 : i32
    %c0_i32_1 = arith.constant 0 : i32
    return %arg0, %c0_i32, %c0_i32_0 : i32, i32, i32
  }
  func.func @transform_15(%arg0: i32) -> (i32, i32, i32) {
    %c0_i32 = arith.constant 0 : i32
    %c0_i32_0 = arith.constant 0 : i32
    %c0_i32_1 = arith.constant 0 : i32
    return %arg0, %c0_i32, %c0_i32_0 : i32, i32, i32
  }
  func.func @transform_16(%arg0: i32) -> (i32, i32, i32) {
    %c0_i32 = arith.constant 0 : i32
    %c0_i32_0 = arith.constant 0 : i32
    %c0_i32_1 = arith.constant 0 : i32
    return %arg0, %c0_i32, %c0_i32_0 : i32, i32, i32
  }
  func.func @transform_17(%arg0: i32) -> (i32, i32, i32) {
    %c0_i32 = arith.constant 0 : i32
    %c0_i32_0 = arith.constant 0 : i32
    %c0_i32_1 = arith.constant 0 : i32
    return %arg0, %c0_i32, %c0_i32_0 : i32, i32, i32
  }
  func.func @transform_18(%arg0: i32) -> (i32, i32, i32) {
    %c0_i32 = arith.constant 0 : i32
    %c0_i32_0 = arith.constant 0 : i32
    %c0_i32_1 = arith.constant 0 : i32
    return %arg0, %c0_i32, %c0_i32_0 : i32, i32, i32
  }
}

</mosaic_0001>

<bundles_post_ra>
// kernel: waveletflow_forward.1
= control target key start
LH: loop header
LB: loop body
LE: loop exit
PB: predicated region body
PF: predicated region fallthrough
CT: control target
= control target key end

     0   :  { %s3306_s0 = inlined_call_operand.vmem [shape: f32[2,3,256], index: 0, kind: input, shape index: {}]   ;;  %s3307_s1 = inlined_call_operand.vmem [shape: f32[256,256], index: 1, kind: input, shape index: {}]   ;;  %s3308_s2 = inlined_call_operand.hbm [shape: f32[64,64], index: 2, kind: input, shape index: {}]   ;;  %s3309_s3 = inlined_call_operand.vmem [shape: f32[16,16], index: 3, kind: input, shape index: {}]   ;;  %s3310_s4 = inlined_call_operand.vmem [shape: f32[4,4], index: 4, kind: input, shape index: {}]   ;;  %s3311_s5 = inlined_call_operand.vmem [shape: f32[4,8,3], index: 5, kind: input, shape index: {}]   ;;  %s3312_s6 = inlined_call_operand.vmem [shape: f32[4,8,1], index: 6, kind: input, shape index: {}]   ;;  %s3313_s7 = inlined_call_operand.vmem [shape: f32[4,9,8], index: 7, kind: input, shape index: {}]   ;;  %s3314_s8 = inlined_call_operand.vmem [shape: f32[4,9,1], index: 8, kind: input, shape index: {}]   ;;  %s3315_s9 = inlined_call_operand.vmem [shape: f32[4,9,1], index: 9, kind: input, shape index: {}]   ;;  %s3316_s10 = inlined_call_operand.vmem [shape: f32[4,9,1], index: 10, kind: input, shape index: {}]   ;;  %s3317_s11 = inlined_call_operand.vmem [shape: f32[3,1], index: 11, kind: input, shape index: {}]   ;;  %s3318_s12 = inlined_call_operand.vmem [shape: f32[3,1], index: 12, kind: input, shape index: {}]   ;;  %s3319_s13 = inlined_call_operand.vmem [shape: f32[2,9,64], index: 13, kind: output, shape index: {0}]   ;;  %s3320_s14 = inlined_call_operand.vmem [shape: f32[2,9,16], index: 14, kind: output, shape index: {1}]   ;;  %s3321_s15 = inlined_call_operand.vmem [shape: f32[2,9,4], index: 15, kind: output, shape index: {2}]   ;;  %s3322_s16 = inlined_call_operand.vmem [shape: f32[2,9,1], index: 16, kind: output, shape index: {3}]   ;;  %s3323_s17 = inlined_call_operand.vmem [shape: f32[2,3,1], index: 17, kind: output, shape index: {4}]   ;;  %s3324_s18 = inlined_call_operand.vmem [shape: f32[2,1,1], index: 18, kind: output, shape index: {5}]  }
   0x1   :  { %3331 = sst [smem:[#allocation6_spill]] %s3306_s0 }
   0x2   :  { %3332 = sst [smem:[#allocation7_spill]] %s3307_s1 }
   0x3   :  { %3333 = sst [smem:[#allocation8_spill]] %s3308_s2 }
   0x4   :  { %24 = vsyncpa [#allocation3], 0  ;;  %s2721_s27 = smov 0  }
   0x5 LB: > { %3334 = sst [smem:[#allocation5_spill]] %s2607_s27  ;;  %s2727_s28 = sadd.s32 4294967295, %s2607_s27   ;;  %s2607_s27 = sphi %s2721_s27, %s30_s27  }
   0x6   : > { %p2252_p0 = scmp.ge.s32.totalorder %s2607_s27, 1  ;;  %p469_p1 = scmp.lt.s32.totalorder %s2607_s27, 3 }
   0x7   : > { %s2609_s29 = smov [#allocation2]   ;;  %p3327_p3 = scmp.eq.s32.totalorder %s2727_s28, 0 }
   0x8   : > { %s484_s30 = sshll.u32 %s2609_s29, 4  ;;  %p2731_p2 = pnand %p2252_p0, %p469_p1  ;;  %s485_s30 = int_to_ptr.vmem [resolvable:$true] %s484_s30 }
   0x9   : > { %s3337_s21 = sld [smem:[#allocation8_spill]] }
   0xa   : > { %s3335_s0 = scalar_select %p2731_p2, 1, 0 }
   0xb   : > { %p2517_p4 = pneg %p2731_p2 }
   0xd   : > { %p2740_p5 = pnand %p3327_p3, %p2517_p4 }
   0xf   : > { %s2569_s22 = scalar_lea.hbm %s3337_s21, 1024  ;;  %p2571_p7 = pneg %p2740_p5 }
  0x10   : > { %p2570_p6 = scmp.ne.s32.totalorder %s3337_s21, %s2569_s22  ;;  %p2576_p10 = scmp.lt.u32.totalorder %s2569_s22, %s3337_s21 }
  0x12   : > { %p2572_p8 = pnand %p2571_p7, %p2570_p6 }
  0x14   : > { %p2573_p9 = pneg %p2572_p8 }
  0x16   : > { %p2578_p11 = pnand %p2576_p10, %p2573_p9 }
  0x18   : > { %2581 = shalt.err (!%p2578_p11)
}
  0x19   : > { %s2582_s26 = scalar_lea.vmem %s485_s30, 1024  ;;  %p2590_p1 = scmp.lt.s32.totalorder %s485_s30, %s485_s30 }
  0x1a   : > { %p2583_p12 = scmp.ne.s32.totalorder %s485_s30, %s2582_s26  ;;  %p2591_p4 = scmp.lt.s32.totalorder %s2582_s26, %s2582_s26 }
  0x1c   : > { %p2585_p13 = pnand %p2583_p12, %p2571_p7  ;;  %p2592_p3 = por %p2591_p4, %p2590_p1 }
  0x1e   : > { %p2586_p0 = pneg %p2585_p13 }
  0x20   : > { %p2593_p2 = pnand %p2592_p3, %p2586_p0 }
  0x22   : > { %2596 = shalt.err (!%p2593_p2)
}
  0x23   : > { %s2610_s29 = smov 128   ;;  %s2611_s1 = smov 8  }
  0x24   : > { %2520 = dma.hbm_to_vmem [thread:$0]  (!%p2740_p5), %s3337_s21, 1024, %s485_s30, [#allocation3], %s2610_s29, %s2610_s29, %s2611_s1  }
  0x25   : > { %p3338_p6 = scmp.ne.s32.totalorder %s3335_s0, 0 }
  0x26   : > { %p3339_p8 = scmp.eq.s32.totalorder (!%p3338_p6), %s2727_s28, 0 }
  0x27   : > { %538 = sbr.rel (%p3338_p6) target bundleno = 2316 (0x90c), region = 72 }
  0x2e   : > { %2602 = dma.done.wait (%p3339_p8), [#allocation3], 1024   ;;  %p3340_p7 = pmov %p3339_p8 }
  0x2f   : > { %v2612_v0 = vmov 0   ;;  %s3341_s24 = sld [smem:[#allocation7_spill]]  ;;  %p614_p2 = scmp.lt.s32.totalorder %s2727_s28, 1  ;;  %v2289_v43 = vld [vmem:[%s3312_s6 + $0x10] sm:$0xff]  ;;  %v883_v47 = vld [vmem:[%s3314_s8] sm:$0xff]  ;;  %v2274_v56 = vld [vmem:[%s3312_s6 + $0x8] sm:$0xff] }
  0x30   : > { %2604 = vsyncadd (%p3340_p7), [#allocation3], 4294966272  ;;  %2549 = vset.pattern.permute.xlu1 %v2612_v0  ;;  %2548 = vset.pattern.permute.xlu0 %v2612_v0  ;;  %s3342_s21 = sld [smem:[#allocation6_spill]]  ;;  %v797_v48 = vld [vmem:[%s3312_s6] sm:$0xff]  ;;  %v2279_v57 = vld [vmem:[%s3314_s8 + $0x10] sm:$0xff]  ;;  %vm1996_vm0 = vcmask 2048  }
  0x31   : > { %s3345_s28 = smov (!%p614_p2, %s2727_s28), 1  ;;  %1451 = vperm.xlu1 %2549, %v2289_v43   ;;  %800 = vperm.xlu0 %2548, %v797_v48   ;;  %v977_v53 = vld [vmem:[%s3315_s9] sm:$0xff]  ;;  %v2284_v63 = vld [vmem:[%s3315_s9 + $0x18] sm:$0x1]  ;;  %s2614_s19 = smov 1   ;;  %vm2615_vm1 = vmmov 0  }
  0x32   : > { %s2320_s22 = sshll.u32 %s3345_s28, 3  ;;  %v979_v59 = vmul.f32 1.442695, %v977_v53  ;;  %vm792_vm2 = vcmask 1042432   ;;  %vm803_vm3 = vcmask 23552   ;;  %s2616_s20 = smov 64  }
  0x33   : > { %vm895_vm4 = vcmask 64512   ;;  %vm794_vm5 = vcmask 1045504   ;;  %vm1027_vm6 = vcmask 523264   ;;  %s2618_s1 = smov 112   ;;  %s2619_s2 = smov 96   ;;  %vm1356_vm7 = vcmask 130048  }
  0x34   : > { %2551 = vpow2.f32 %v979_v59  ;;  %v2283_v59 = vld [vmem:[%s3315_s9 + $0x10] sm:$0xff]  ;;  %s2621_s23 = smov 124   ;;  %s2622_s25 = smov 120   ;;  %vm1686_vm8 = vcmask 1043456   ;;  %vm1679_vm9 = vcmask 31744   ;;  %vm1988_vm10 = vcmask 0  }
  0x35   : > { %v648_v1 = vld [vmem:[%s3341_s24 + $0x8] sm:$0xff]  ;;  %v650_v2 = vld [vmem:[%s3341_s24 + $0x18] sm:$0xff]  ;;  %v647_v3 = vld [vmem:[%s3341_s24] sm:$0xff]  ;;  %887 = vperm.xlu1 %2549, %v883_v47   ;;  %1128 = vperm.xlu0 %2548, %v2274_v56   ;;  %s2623_s30 = smov 4   ;;  %vm1029_vm11 = vcmask 516096   ;;  %vm1358_vm12 = vcmask 122880  }
  0x36   : > { %v2430_v4 = vpack.c.bf16 %v650_v2, %v648_v1  ;;  %v649_v5 = vld [vmem:[%s3341_s24 + $0x10] sm:$0xff]  ;;  %v652_v6 = vld [vmem:[%s3341_s24 + $0x28] sm:$0xff]  ;;  %v654_v7 = vld [vmem:[%s3341_s24 + $0x38] sm:$0xff]  ;;  %s618_s27 = scalar_lea.vmem %s3342_s21, %s2320_s22  ;;  %s2620_s22 = smov 16   ;;  %vm1681_vm13 = vcmask 24576   ;;  %vm1986_vm14 = vcmask 7168  }
  0x37   : > { %v2432_v8 = vpack.c.bf16 %v649_v5, %v647_v3  ;;  %v2434_v9 = vpack.c.bf16 %v654_v7, %v652_v6  ;;  %v651_v10 = vld [vmem:[%s3341_s24 + $0x20] sm:$0xff]  ;;  %v653_v11 = vld [vmem:[%s3341_s24 + $0x30] sm:$0xff]  ;;  %v656_v12 = vld [vmem:[%s3341_s24 + $0x48] sm:$0xff]  ;;  %v1309_v5 = vmul.f32 1.442695, %v2284_v63 }
  0x38   : > { %2431 = vmatprep.subr.bf16.mxu0 %v2430_v4  ;;  %v658_v13 = vld [vmem:[%s3341_s24 + $0x58] sm:$0xff]  ;;  %v2436_v14 = vpack.c.bf16 %v653_v11, %v651_v10  ;;  %v655_v16 = vld [vmem:[%s3341_s24 + $0x40] sm:$0xff]  ;;  %v657_v17 = vld [vmem:[%s3341_s24 + $0x50] sm:$0xff] }
  0x39   : > { %2433 = vmatpush1.bf16.msra.mxu0 %v2432_v8  ;;  %v2438_v15 = vpack.c.bf16 %v658_v13, %v656_v12  ;;  %v660_v18 = vld [vmem:[%s3341_s24 + $0x68] sm:$0xff]  ;;  %v662_v19 = vld [vmem:[%s3341_s24 + $0x78] sm:$0xff]  ;;  %v2440_v20 = vpack.c.bf16 %v657_v17, %v655_v16  ;;  %v659_v22 = vld [vmem:[%s3341_s24 + $0x60] sm:$0xff]  ;;  %1215 = vperm.xlu1 %2549, %v2279_v57   ;;  %2553 = vpow2.f32 %v1309_v5 }
  0x3a   : > { %2435 = vmatprep.subr.bf16.mxu0 %v2434_v9  ;;  %v2442_v21 = vpack.c.bf16 %v662_v19, %v660_v18  ;;  %v661_v23 = vld [vmem:[%s3341_s24 + $0x70] sm:$0xff]  ;;  %v664_v24 = vld [vmem:[%s3341_s24 + $0x88] sm:$0xff]  ;;  %v666_v25 = vld [vmem:[%s3341_s24 + $0x98] sm:$0xff] }
  0x3b   : > { %v2444_v26 = vpack.c.bf16 %v661_v23, %v659_v22  ;;  %v2446_v27 = vpack.c.bf16 %v666_v25, %v664_v24  ;;  %v663_v28 = vld [vmem:[%s3341_s24 + $0x80] sm:$0xff]  ;;  %v665_v29 = vld [vmem:[%s3341_s24 + $0x90] sm:$0xff]  ;;  %v668_v30 = vld [vmem:[%s3341_s24 + $0xa8] sm:$0xff] }
  0x3c   : > { %v670_v31 = vld [vmem:[%s3341_s24 + $0xb8] sm:$0xff]  ;;  %v2448_v32 = vpack.c.bf16 %v665_v29, %v663_v28  ;;  %v667_v34 = vld [vmem:[%s3341_s24 + $0xa0] sm:$0xff]  ;;  %v669_v35 = vld [vmem:[%s3341_s24 + $0xb0] sm:$0xff] }
  0x3d   : > { %2437 = vmatpush1.bf16.msra.mxu0 %v2436_v14  ;;  %v2450_v33 = vpack.c.bf16 %v670_v31, %v668_v30  ;;  %v672_v36 = vld [vmem:[%s3341_s24 + $0xc8] sm:$0xff]  ;;  %v674_v37 = vld [vmem:[%s3341_s24 + $0xd8] sm:$0xff]  ;;  %v2452_v38 = vpack.c.bf16 %v669_v35, %v667_v34  ;;  %v671_v39 = vld [vmem:[%s3341_s24 + $0xc0] sm:$0xff] }
  0x3e   : > { %2439 = vmatprep.subr.bf16.mxu0 %v2438_v15  ;;  %v2454_v40 = vpack.c.bf16 %v674_v37, %v672_v36  ;;  %v673_v41 = vld [vmem:[%s3341_s24 + $0xd0] sm:$0xff]  ;;  %v2858_v42 = vld [vmem:[%s618_s27] sm:$0x77]  ;;  %v676_v44 = vld [vmem:[%s3341_s24 + $0xe8] sm:$0xff]  ;;  %v2552_v25 = vpop.eup %2551  ;;  %s2625_s27 = smov 127  }
  0x3f   : > { %v678_v45 = vld [vmem:[%s3341_s24 + $0xf8] sm:$0xff]  ;;  %v712_v46 = vcombine.high %v2858_v42, %v2858_v42  ;;  %v2456_v49 = vpack.c.bf16 %v673_v41, %v671_v39  ;;  %v675_v51 = vld [vmem:[%s3341_s24 + $0xe0] sm:$0xff]  ;;  %v677_v52 = vld [vmem:[%s3341_s24 + $0xf0] sm:$0xff] }
  0x40   : > { %v2458_v50 = vpack.c.bf16 %v678_v45, %v676_v44  ;;  %v680_v54 = vld [vmem:[%s3341_s24 + $0x108] sm:$0xff]  ;;  %v682_v55 = vld [vmem:[%s3341_s24 + $0x118] sm:$0xff]  ;;  %v2460_v58 = vpack.c.bf16 %v677_v52, %v675_v51  ;;  %v679_v61 = vld [vmem:[%s3341_s24 + $0x100] sm:$0xff] }
  0x41   : > { %2441 = vmatpush1.bf16.msra.mxu0 %v2440_v20  ;;  %778 = vmatprep.mubr.f32.mxu0 %v712_v46  ;;  %v2462_v60 = vpack.c.bf16 %v682_v55, %v680_v54  ;;  %v681_v62 = vld [vmem:[%s3341_s24 + $0x110] sm:$0xff]  ;;  %v684_v0 = vld [vmem:[%s3341_s24 + $0x128] sm:$0xff]  ;;  %v686_v1 = vld [vmem:[%s3341_s24 + $0x138] sm:$0xff] }
  0x42   : > { %2443 = vmatprep.subr.bf16.mxu0 %v2442_v21  ;;  %v884_v2 = vld [vmem:[%s3314_s8 + $0x8] sm:$0x1]  ;;  %v2294_v3 = vld [vmem:[%s3314_s8 + $0x20] sm:$0xff]  ;;  %v2464_v4 = vpack.c.bf16 %v681_v62, %v679_v61  ;;  %v2466_v6 = vpack.c.bf16 %v686_v1, %v684_v0  ;;  %v685_v8 = vld [vmem:[%s3341_s24 + $0x130] sm:$0xff]  ;;  %v2613_v0 = vmov 0.0  }
  0x43   : > { %v683_v7 = vld [vmem:[%s3341_s24 + $0x120] sm:$0xff]  ;;  %892 = vperm.xlu0 %2548, %v884_v2   ;;  %v2299_v9 = vld [vmem:[%s3315_s9 + $0x28] sm:$0x1]  ;;  %v690_v11 = vld [vmem:[%s3341_s24 + $0x158] sm:$0xff]  ;;  %1538 = vperm.xlu1 %2549, %v2294_v3  }
  0x44   : > { %v688_v10 = vld [vmem:[%s3341_s24 + $0x148] sm:$0xff]  ;;  %v2280_v12 = vld [vmem:[%s3314_s8 + $0x18] sm:$0x1]  ;;  %v2468_v13 = vpack.c.bf16 %v685_v8, %v683_v7  ;;  %v1632_v14 = vmul.f32 1.442695, %v2299_v9  ;;  %v687_v16 = vld [vmem:[%s3341_s24 + $0x140] sm:$0xff]  ;;  %2359 = vmatprep.subr.mxu1 %v2613_v0  ;;  %2361 = vmatprep.mubr.msk.f32.mxu1 %vm2615_vm1, %v2613_v0 }
  0x45   : > { %2445 = vmatpush1.bf16.msra.mxu0 %v2444_v26  ;;  %v2470_v15 = vpack.c.bf16 %v690_v11, %v688_v10  ;;  %v689_v17 = vld [vmem:[%s3341_s24 + $0x150] sm:$0xff]  ;;  %v692_v18 = vld [vmem:[%s3341_s24 + $0x168] sm:$0xff]  ;;  %v694_v19 = vld [vmem:[%s3341_s24 + $0x178] sm:$0xff] }
  0x46   : > { %2447 = vmatprep.subr.bf16.mxu0 %v2446_v27  ;;  %v2295_v20 = vld [vmem:[%s3314_s8 + $0x28] sm:$0x1]  ;;  %v2472_v21 = vpack.c.bf16 %v689_v17, %v687_v16  ;;  %2555 = vpow2.f32 %v1632_v14  ;;  %v2474_v22 = vpack.c.bf16 %v694_v19, %v692_v18  ;;  %v691_v23 = vld [vmem:[%s3341_s24 + $0x160] sm:$0xff]  ;;  %v693_v24 = vld [vmem:[%s3341_s24 + $0x170] sm:$0xff] }
  0x47   : > { %1220 = vperm.xlu0 %2548, %v2280_v12   ;;  %v696_v26 = vld [vmem:[%s3341_s24 + $0x188] sm:$0xff]  ;;  %v698_v27 = vld [vmem:[%s3341_s24 + $0x198] sm:$0xff]  ;;  %v2476_v28 = vpack.c.bf16 %v693_v24, %v691_v23  ;;  %v695_v30 = vld [vmem:[%s3341_s24 + $0x180] sm:$0xff] }
  0x48   : > { %v2478_v29 = vpack.c.bf16 %v698_v27, %v696_v26  ;;  %v697_v31 = vld [vmem:[%s3341_s24 + $0x190] sm:$0xff]  ;;  %v702_v34 = vld [vmem:[%s3341_s24 + $0x1b8] sm:$0xff]  ;;  %v699_v37 = vld [vmem:[%s3341_s24 + $0x1a0] sm:$0xff] }
  0x49   : > { %2449 = vmatpush1.bf16.msra.mxu0 %v2448_v32  ;;  %v2554_v32 = vpop.eup %2553  ;;  %v2480_v35 = vpack.c.bf16 %v697_v31, %v695_v30  ;;  %v706_v41 = vld [vmem:[%s3341_s24 + $0x1d8] sm:$0xff]  ;;  %v703_v45 = vld [vmem:[%s3341_s24 + $0x1c0] sm:$0xff]  ;;  %v705_v46 = vld [vmem:[%s3341_s24 + $0x1d0] sm:$0xff] }
  0x4a   : > { %2451 = vmatprep.subr.bf16.mxu0 %v2450_v33  ;;  %v700_v33 = vld [vmem:[%s3341_s24 + $0x1a8] sm:$0xff]  ;;  %v710_v48 = vld [vmem:[%s3341_s24 + $0x1f8] sm:$0xff]  ;;  %v707_v52 = vld [vmem:[%s3341_s24 + $0x1e0] sm:$0xff] }
  0x4b   : > { %1543 = vperm.xlu0 %2548, %v2295_v20   ;;  %v2482_v36 = vpack.c.bf16 %v702_v34, %v700_v33  ;;  %v708_v47 = vld [vmem:[%s3341_s24 + $0x1e8] sm:$0xff]  ;;  %v709_v53 = vld [vmem:[%s3341_s24 + $0x1f0] sm:$0xff]  ;;  %v3012_v55 = vld [vmem:[%s3317_s11] sm:$0x7] }
  0x4c   : > { %v2490_v51 = vpack.c.bf16 %v710_v48, %v708_v47  ;;  %v2492_v54 = vpack.c.bf16 %v709_v53, %v707_v52  ;;  %v1998_v56 = vsel %vm1996_vm0, %v3012_v55, 0.0  ;;  %v978_v57 = vld [vmem:[%s3315_s9 + $0x8] sm:$0x1]  ;;  %v2298_v61 = vld [vmem:[%s3315_s9 + $0x20] sm:$0xff]  ;;  %v2315_v1 = vld [vmem:[%s3315_s9 + $0x38] sm:$0x1] }
  0x4d   : > { %2453 = vmatpush1.bf16.msra.mxu0 %v2452_v38  ;;  %v701_v38 = vld [vmem:[%s3341_s24 + $0x1b0] sm:$0xff]  ;;  %v1943_v3 = vmul.f32 1.442695, %v2315_v1  ;;  %v2317_v8 = vld [vmem:[%s3316_s10 + $0x38] sm:$0x1]  ;;  %v796_v24 = vld [vmem:[%s3311_s5] sm:$0xff] }
  0x4e   : > { %2455 = vmatprep.subr.bf16.mxu0 %v2454_v40  ;;  %v704_v40 = vld [vmem:[%s3341_s24 + $0x1c8] sm:$0xff]  ;;  %v2484_v43 = vpack.c.bf16 %v701_v38, %v699_v37  ;;  %v2285_v5 = vld [vmem:[%s3316_s10 + $0x10] sm:$0xff]  ;;  %v2286_v9 = vld [vmem:[%s3316_s10 + $0x18] sm:$0x1] }
  0x4f   : > { %985 = vperm.xlu0 %2548, %v2552_v25   ;;  %v2486_v44 = vpack.c.bf16 %v706_v41, %v704_v40  ;;  %v2301_v10 = vld [vmem:[%s3316_s10 + $0x28] sm:$0x1]  ;;  %v2314_v40 = vld [vmem:[%s3315_s9 + $0x30] sm:$0xff]  ;;  %v1031_v52 = vld [vmem:[#allocation2] sm:$0xff] }
  0x50   : > { %v2556_v39 = vpop.eup %2555  ;;  %v1941_v41 = vmul.f32 1.442695, %v2314_v40  ;;  %v2316_v48 = vld [vmem:[%s3316_s10 + $0x30] sm:$0xff]  ;;  %v1032_v53 = vld [vmem:[#allocation2 + $0x8] sm:$0xff] }
  0x51   : > { %2457 = vmatpush1.bf16.msra.mxu0 %v2456_v49  ;;  %v996_v49 = vld [vmem:[%s3316_s10 + $0x8] sm:$0x1]  ;;  %v1037_v1 = vld [vmem:[#allocation2 + $0x30] sm:$0xff] }
  0x52   : > { %2459 = vmatprep.subr.bf16.mxu0 %v2458_v50  ;;  %v2488_v50 = vpack.c.bf16 %v705_v46, %v703_v45 }
  0x53   : > { %1318 = vperm.xlu0 %2548, %v2554_v32  }
  0x55   : > { %2461 = vmatpush1.bf16.msra.mxu0 %v2460_v58  ;;  %v981_v58 = vmul.f32 1.442695, %v978_v57  ;;  %v2495_v57 = vpack.c.bf16 %v1032_v53, %v1031_v52 }
  0x56   : > { %2463 = vmatprep.subr.bf16.mxu0 %v2462_v60  ;;  %v1307_v60 = vmul.f32 1.442695, %v2283_v59  ;;  %v1034_v59 = vld [vmem:[#allocation2 + $0x18] sm:$0xff] }
  0x57   : > { %1641 = vperm.xlu0 %2548, %v2556_v39   ;;  %2557 = vpow2.f32 %v981_v58  ;;  %v1033_v58 = vld [vmem:[#allocation2 + $0x10] sm:$0xff] }
  0x58   : > { %2559 = vpow2.f32 %v1307_v60  ;;  %v2617_v60 = vmov 0.0|0.0  }
  0x59   : > { %2465 = vmatpush1.bf16.msra.mxu0 %v2464_v4  ;;  %v995_v4 = vld [vmem:[%s3316_s10] sm:$0xff] }
  0x5a   : > { %2467 = vmatprep.subr.bf16.mxu0 %v2466_v6  ;;  %v2300_v6 = vld [vmem:[%s3316_s10 + $0x20] sm:$0xff] }
  0x5b   : > { %1004 = vperm.xlu0 %2548, %v996_v49  }
  0x5d   : > { %2469 = vmatpush1.bf16.msra.mxu0 %v2468_v13 }
  0x5e   : > { %2471 = vmatprep.subr.bf16.mxu0 %v2470_v15 }
  0x5f   : > { %1333 = vperm.xlu0 %2548, %v2286_v9  }
  0x61   : > { %2473 = vmatpush1.bf16.msra.mxu0 %v2472_v21  ;;  %v2558_v62 = vpop.eup %2557 }
  0x62   : > { %2475 = vmatprep.subr.bf16.mxu0 %v2474_v22  ;;  %v2560_v63 = vpop.eup %2559 }
  0x63   : > { %1656 = vperm.xlu0 %2548, %v2301_v10  }
  0x65   : > { %2477 = vmatpush1.bf16.msra.mxu0 %v2476_v28 }
  0x66   : > { %2479 = vmatprep.subr.bf16.mxu0 %v2478_v29 }
  0x67   : > { %1999 = vadd.xlane.f32.xlu1 %v1998_v56  ;;  %v882_v56 = vld [vmem:[%s3313_s7 + $0x8] sm:$0x1] }
  0x69   : > { %2481 = vmatpush1.bf16.msra.mxu0 %v2480_v35 }
  0x6a   : > { %2483 = vmatprep.subr.bf16.mxu0 %v2482_v36  ;;  %v881_v36 = vld [vmem:[%s3313_s7] sm:$0xff] }
  0x6d   : > { %2485 = vmatpush1.bf16.msra.mxu0 %v2484_v43 }
  0x6e   : > { %2487 = vmatprep.subr.bf16.mxu0 %v2486_v44 }
  0x71   : > { %2489 = vmatpush1.bf16.msra.mxu0 %v2488_v50 }
  0x72   : > { %2491 = vmatprep.subr.bf16.mxu0 %v2490_v51 }
  0x75   : > { %2493 = vmatpush1.bf16.msra.mxu0 %v2492_v54 }
  0x78   : > { %779 = vmatmul.mubr.f32.vlgmr.msra.gmra.mrb[0].mxu0 %v2858_v42  ;;  %v1630_v42 = vmul.f32 1.442695, %v2298_v61  ;;  %990 = vperm.xlu1 %2549, %v2558_v62   ;;  %v2498_v61 = vpack.c.bf16 %v1034_v59, %v1033_v58  ;;  %v1036_v62 = vld [vmem:[#allocation2 + $0x28] sm:$0xff] }
  0x7a   : > { %2561 = vpow2.f32 %v1630_v42  ;;  %v1035_v42 = vld [vmem:[#allocation2 + $0x20] sm:$0xff] }
  0x7b   : > { %2563 = vpow2.f32 %v1943_v3 }
  0x7c   : > { %1313 = vperm.xlu1 %2549, %v2560_v63   ;;  %2565 = vpow2.f32 %v1941_v41  ;;  %v2501_v63 = vpack.c.bf16 %v1036_v62, %v1035_v42 }
  0x84   : > { %v2562_v2 = vpop.eup %2561 }
  0x85   : > { %1636 = vperm.xlu1 %2549, %v2562_v2   ;;  %v2564_v7 = vpop.eup %2563  ;;  %v1038_v2 = vld [vmem:[#allocation2 + $0x38] sm:$0xff] }
  0x86   : > { %v2566_v47 = vpop.eup %2565  ;;  %v2504_v3 = vpack.c.bf16 %v1038_v2, %v1037_v1 }
  0x87   : > { %1947 = vrot.lane.b32.xlu0 %v2566_v47, %s2614_s19 }
  0x89   : > { %999 = vperm.xlu1 %2549, %v995_v4  }
  0x8b   : > { %1960 = vrot.lane.b32.xlu0 %v2316_v48, %s2614_s19 }
  0x8d   : > { %1328 = vperm.xlu1 %2549, %v2285_v5  }
  0x91   : > { %1651 = vperm.xlu1 %2549, %v2300_v6  }
  0x95   : > { %1949 = vrot.lane.b32.xlu1 %v2564_v7, %s2614_s19 }
  0x99   : > { %1962 = vrot.lane.b32.xlu1 %v2317_v8, %s2614_s19  ;;  %v2273_v8 = vld [vmem:[%s3311_s5 + $0x8] sm:$0xff] }
  0xb0   : > { %v801_v11 = vpop.permute.xlu0 %800  ;;  %v3056_v14 = vpop.permute.xlu1 %1451 }
  0xb4   : > { %v3052_v12 = vpop.permute.xlu0 %1128  ;;  %v3060_v16 = vpop.permute.xlu1 %887 }
  0xb8   : > { %v3064_v18 = vpop.permute.xlu1 %1215 }
  0xc2   : > { %v3054_v13 = vpop.permute.xlu0 %892  ;;  %v3068_v20 = vpop.permute.xlu1 %1538 }
  0xc6   : > { %v3058_v15 = vpop.permute.xlu0 %1220 }
  0xca   : > { %v3062_v17 = vpop.permute.xlu0 %1543 }
  0xce   : > { %v3066_v19 = vpop.permute.xlu0 %985 }
  0xd2   : > { %v3070_v21 = vpop.permute.xlu0 %1318 }
  0xd6   : > { %v3074_v23 = vpop.permute.xlu0 %1641 }
  0xda   : > { %v1005_v30 = vpop.permute.xlu0 %1004 }
  0xf4   : > { %v3072_v22 = vpop.xlane.xlu1 %1999 }
  0xf8   : > { %v991_v27 = vpop.permute.xlu1 %990 }
  0xfc   : > { %v3087_v33 = vpop.permute.xlu1 %1313 }
 0x104   : > { %v3089_v34 = vpop.permute.xlu1 %1636 }
 0x108   : > { %v3091_v35 = vpop.permute.xlu1 %999 }
 0x10c   : > { %v3097_v37 = vpop.permute.xlu1 %1328 }
 0x110   : > { %v3099_v38 = vpop.permute.xlu1 %1651 }
 0x114   : > { %v3101_v39 = vpop.permute.xlu1 %1949 }
 0x118   : > { %v3106_v43 = vpop.permute.xlu1 %1962 }
 0x14b   : > { %v3079_v25 = vpop.f32.mrb[0].mxu0 }
 0x14c   : > { %v782_v26 = vpop.f32.mrb[1].mxu0  ;;  %2360 = vmatpush3.msk.msra.mxu1 %vm792_vm2, %v3079_v25 }
 0x14d   : > { %v786_v28 = vrot.slane %v782_v26, 5  ;;  %v790_v29 = vrot.slane %v782_v26, 2  ;;  %2362 = vmatmul.mubr.msk.f32.vlgmr.msra.gmra.mrb[0].mxu1 %vm803_vm3, %v796_v24  ;;  %v2277_v26 = vld [vmem:[%s3313_s7 + $0x10] sm:$0xff] }
 0x14e   : > { %2366 = vmatprep.mubr.msk.f32.mxu1 %vm895_vm4, %v881_v36 }
 0x14f   : > { %v994_v31 = vmul.f32 %v991_v27, %v790_v29  ;;  %787 = vrot.lane.b32.xlu1 %v786_v28, %s2616_s20 }
 0x151   : > { %v3085_v32 = vadd.f32 %v1005_v30, %v994_v31 }
 0x1c1   : > { %v788_v44 = vpop.permute.xlu1 %787 }
 0x1c2   : > { %v793_v45 = vsel %vm792_vm2, %v3079_v25, %v788_v44  ;;  %v1360_v44 = vld [vmem:[%s3309_s3] sm:$0xff] }
 0x1c3   : > { %v795_v46 = vsel %vm794_vm5, %v793_v45, %v790_v29  ;;  %v1361_v45 = vld [vmem:[%s3309_s3 + $0x8] sm:$0xff] }
 0x1c4   : > { %v993_v28 = vmul.f32 %v3066_v19, %v795_v46  ;;  %v2278_v19 = vld [vmem:[%s3313_s7 + $0x18] sm:$0x1] }
 0x1c6   : > { %v1007_v29 = vadd.f32 %v3091_v35, %v993_v28  ;;  %v2507_v35 = vpack.c.bf16 %v1361_v45, %v1360_v44 }
 0x220   : > { %v876_v49 = vpop.f32.mrb[0].mxu1 }
 0x221   : > { %v877_v50 = vadd.f32 %v876_v49, %v801_v11  ;;  %v2363_v51 = vpop.f32.mrb[1].mxu1 }
 0x223   : > { %v880_v54 = vmax.f32 %v877_v50, 0.0  ;;  %v2288_v50 = vld [vmem:[%s3311_s5 + $0x10] sm:$0xff] }
 0x225   : > { %2364 = vmatprep.subr.mxu1 %v880_v54 }
 0x226   : > { %2365 = vmatpush3.msra.mxu1 %v880_v54 }
 0x227   : > { %2367 = vmatmul.mubr.msk.f32.vlgmr.msra.gmra.mrb[2].mxu1 %vm895_vm4, %v882_v56  ;;  %2494 = vmatprep.subr.bf16.mxu1 %v2617_v60 }
 0x228   : > { %2496 = vmatpush3.bf16.msra.mxu1 %v2495_v57  ;;  %2385 = vmatprep.mubr.msk.f32.mxu1 %vm2615_vm1, %v2613_v0 }
 0x229   : > { %2497 = vmatprep.subr.bf16.mxu1 %v2617_v60 }
 0x22c   : > { %2499 = vmatpush3.bf16.msra.mxu1 %v2498_v61 }
 0x22d   : > { %2500 = vmatprep.subr.bf16.mxu1 %v2617_v60 }
 0x230   : > { %2502 = vmatpush3.bf16.msra.mxu1 %v2501_v63 }
 0x231   : > { %2503 = vmatprep.subr.bf16.mxu1 %v2617_v60 }
 0x234   : > { %2505 = vmatpush3.bf16.msra.mxu1 %v2504_v3 }
 0x235   : > { %2388 = vmatprep.subr.mxu1 %v2613_v0 }
 0x237   : > { %2386 = vmatmul.mubr.msk.f32.vlgmr.msra.gmra.mrb[4].mxu1 %vm1027_vm6, %v3079_v25 }
 0x238   : > { %2390 = vmatprep.mubr.msk.f32.mxu1 %vm2615_vm1, %v2613_v0 }
 0x2fa   : > { %v2368_v4 = vpop.f32.mrb[2].mxu1 }
 0x2fb   : > { %v974_v5 = vadd.f32 %v2368_v4, %v3054_v13  ;;  %v968_v6 = vpop.f32.mrb[3].mxu1  ;;  %v3137_v13 = vpop.permute.xlu0 %1333  ;;  %v2293_v4 = vld [vmem:[%s3313_s7 + $0x28] sm:$0x1] }
 0x2fc   : > { %v969_v7 = vadd.f32 %v968_v6, %v3060_v16 }
 0x2fd   : > { %1013 = vrot.lane.b32.xlu1 %v974_v5, %s2616_s20  ;;  %v1683_v5 = vld [vmem:[%s3310_s4] sm:$0xf] }
 0x2fe   : > { %1011 = vrot.lane.b32.xlu0 %v969_v7, %s2616_s20 }
 0x2ff   : > { %v3139_v16 = vpop.permute.xlu0 %1656 }
 0x303   : > { %v3141_v25 = vpop.permute.xlu0 %1947 }
 0x307   : > { %v3147_v27 = vpop.permute.xlu0 %1960 }
 0x30a   : > { %v1107_v9 = vpop.f32.mrb[4].mxu1 }
 0x30b   : > { %v2387_v10 = vpop.f32.mrb[5].mxu1  ;;  %2389 = vmatpush3.msk.msra.mxu1 %vm792_vm2, %v1107_v9  ;;  %v1112_v11 = vrot.slane %v1107_v9, 5  ;;  %v1116_v24 = vrot.slane %v1107_v9, 2 }
 0x30c   : > { %2391 = vmatmul.mubr.msk.f32.vlgmr.msra.gmra.mrb[6].mxu1 %vm803_vm3, %v2273_v8  ;;  %v2304_v8 = vld [vmem:[%s3311_s5 + $0x18] sm:$0xff] }
 0x30d   : > { %1113 = vrot.lane.b32.xlu0 %v1112_v11, %s2618_s1  ;;  %1117 = vrot.lane.b32.xlu1 %v1116_v24, %s2619_s2  ;;  %s2624_s2 = smov 126  }
 0x30e   : > { %2395 = vmatprep.mubr.msk.f32.mxu1 %vm895_vm4, %v2277_v26 }
 0x36f   : > { %v3187_v54 = vpop.permute.xlu1 %1013 }
 0x370   : > { %v1012_v30 = vpop.permute.xlu0 %1011 }
 0x371   : > { %v3151_v31 = vadd.f32 %v1012_v30, %v1007_v29  ;;  %v2001_v30 = vrot.slane %v3072_v22, 4 }
 0x37f   : > { %v1114_v56 = vpop.permute.xlu0 %1113  ;;  %v3190_v58 = vpop.permute.xlu1 %1117 }
 0x380   : > { %v1120_v57 = vsel %vm792_vm2, %v1107_v9, %v1114_v56 }
 0x381   : > { %v1121_v59 = vsel %vm794_vm5, %v1120_v57, %v3190_v58 }
 0x3df   : > { %v1202_v36 = vpop.f32.mrb[6].mxu1 }
 0x3e0   : > { %v1203_v40 = vadd.f32 %v1202_v36, %v3052_v12  ;;  %v2392_v41 = vpop.f32.mrb[7].mxu1  ;;  %v2002_v36 = vadd.f32 %v2001_v30, %v3072_v22 }
 0x3e2   : > { %v1206_v47 = vmax.f32 %v1203_v40, 0.0  ;;  %v2003_v40 = vrot.slane %v2002_v36, 2 }
 0x3e4   : > { %2393 = vmatprep.subr.mxu1 %v1206_v47  ;;  %v2004_v41 = vadd.f32 %v2003_v40, %v2002_v36 }
 0x3e5   : > { %2394 = vmatpush3.msra.mxu1 %v1206_v47 }
 0x3e6   : > { %2396 = vmatmul.mubr.msk.f32.vlgmr.msra.gmra.mrb[8].mxu1 %vm895_vm4, %v2278_v19  ;;  %2506 = vmatprep.subr.bf16.mxu1 %v2617_v60  ;;  %v1321_v60 = vmul.f32 %v3087_v33, %v1121_v59  ;;  %v2005_v44 = vrot.slane %v2004_v41, 1 }
 0x3e7   : > { %2508 = vmatpush3.bf16.msra.mxu1 %v2507_v35  ;;  %2402 = vmatprep.mubr.msk.f32.mxu1 %vm2615_vm1, %v2613_v0 }
 0x3e8   : > { %2405 = vmatprep.subr.mxu1 %v2613_v0  ;;  %v1336_v61 = vadd.f32 %v3097_v37, %v1321_v60  ;;  %v2006_v45 = vadd.f32 %v2005_v44, %v2004_v41 }
 0x3ea   : > { %2403 = vmatmul.mubr.msk.f32.vlgmr.msra.gmra.mrb[10].mxu1 %vm1356_vm7, %v1107_v9  ;;  %2509 = vpush %v2006_v45 }
 0x3eb   : > { %2407 = vmatprep.mubr.msk.f32.mxu1 %vm2615_vm1, %v2613_v0 }
 0x4b9   : > { %v2397_v12 = vpop.f32.mrb[8].mxu1 }
 0x4ba   : > { %v1301_v46 = vadd.f32 %v2397_v12, %v3058_v15  ;;  %v1295_v48 = vpop.f32.mrb[9].mxu1 }
 0x4bb   : > { %v1296_v49 = vadd.f32 %v1295_v48, %v3064_v18  ;;  %v2292_v18 = vld [vmem:[%s3313_s7 + $0x20] sm:$0xff] }
 0x4bc   : > { %1342 = vrot.lane.b32.xlu1 %v1301_v46, %s2620_s22 }
 0x4bd   : > { %v3175_v51 = vpop.f32.mrb[10].mxu1  ;;  %1340 = vrot.lane.b32.xlu0 %v1296_v49, %s2620_s22 }
 0x4be   : > { %v2404_v52 = vpop.f32.mrb[11].mxu1  ;;  %2406 = vmatpush3.msk.msra.mxu1 %vm792_vm2, %v3175_v51  ;;  %v1435_v53 = vrot.slane %v3175_v51, 5  ;;  %v1439_v15 = vrot.slane %v3175_v51, 2 }
 0x4bf   : > { %2408 = vmatmul.mubr.msk.f32.vlgmr.msra.gmra.mrb[12].mxu1 %vm803_vm3, %v2288_v50 }
 0x4c0   : > { %1436 = vrot.lane.b32.xlu1 %v1435_v53, %s2621_s23  ;;  %2412 = vmatprep.mubr.msk.f32.mxu1 %vm895_vm4, %v2292_v18 }
 0x4c1   : > { %1440 = vrot.lane.b32.xlu0 %v1439_v15, %s2622_s25  ;;  %s2267_s25 = sshll.u32 %s3345_s28, 2 }
 0x4c2   : > { %s642_s22 = scalar_lea.vmem %s3323_s17, %s2267_s25 }
 0x52e   : > { %v1343_v47 = vpop.permute.xlu1 %1342 }
 0x52f   : > { %v1341_v42 = vpop.permute.xlu0 %1340 }
 0x530   : > { %v3196_v62 = vadd.f32 %v1341_v42, %v1336_v61 }
 0x532   : > { %v1437_v19 = vpop.permute.xlu1 %1436 }
 0x533   : > { %v1443_v35 = vsel %vm792_vm2, %v3175_v51, %v1437_v19  ;;  %v1441_v12 = vpop.permute.xlu0 %1440 }
 0x534   : > { %v1444_v46 = vsel %vm794_vm5, %v1443_v35, %v1441_v12 }
 0x535   : > { %v1644_v22 = vmul.f32 %v3089_v34, %v1444_v46  ;;  %v2305_v34 = vld [vmem:[%s3312_s6 + $0x18] sm:$0xff] }
 0x537   : > { %v1659_v48 = vadd.f32 %v3099_v38, %v1644_v22 }
 0x592   : > { %v1525_v63 = vpop.f32.mrb[12].mxu1 }
 0x593   : > { %v1526_v1 = vadd.f32 %v1525_v63, %v3056_v14  ;;  %v2409_v2 = vpop.f32.mrb[13].mxu1  ;;  %v1991_v14 = vmul.f32 1.442695, %v3012_v55 }
 0x595   : > { %v1529_v3 = vmax.f32 %v1526_v1, 0.0  ;;  %2567 = vpow2.f32 %v1991_v14 }
 0x597   : > { %2410 = vmatprep.subr.mxu1 %v1529_v3 }
 0x598   : > { %2411 = vmatpush3.msra.mxu1 %v1529_v3  ;;  %v2309_v3 = vld [vmem:[%s3313_s7 + $0x38] sm:$0x1] }
 0x599   : > { %2413 = vmatmul.mubr.msk.f32.vlgmr.msra.gmra.mrb[14].mxu1 %vm895_vm4, %v2293_v4  ;;  %2415 = vmatprep.subr.mxu1 %v2613_v0 }
 0x59a   : > { %2416 = vmatpush3.msk.msra.mxu1 %vm1686_vm8, %v1683_v5  ;;  %2417 = vmatprep.mubr.msk.f32.mxu1 %vm2615_vm1, %v2613_v0 }
 0x59b   : > { %2420 = vmatprep.subr.mxu1 %v2613_v0 }
 0x59d   : > { %2418 = vmatmul.mubr.msk.f32.vlgmr.msra.gmra.mrb[16].mxu1 %vm1679_vm9, %v3175_v51 }
 0x59e   : > { %2422 = vmatprep.mubr.msk.f32.mxu1 %vm2615_vm1, %v2613_v0  ;;  %v1994_v0 = vld [vmem:[%s3318_s12] sm:$0x7] }
 0x59f   : > { %v2568_v6 = vpop.eup %2567 }
 0x66c   : > { %v2414_v33 = vpop.f32.mrb[14].mxu1 }
 0x66d   : > { %v1618_v37 = vpop.f32.mrb[15].mxu1  ;;  %v1624_v26 = vadd.f32 %v2414_v33, %v3062_v17  ;;  %v2308_v17 = vld [vmem:[%s3313_s7 + $0x30] sm:$0xff] }
 0x66e   : > { %v1619_v7 = vadd.f32 %v1618_v37, %v3068_v20 }
 0x670   : > { %v1756_v9 = vpop.f32.mrb[16].mxu1  ;;  %1663 = vrot.lane.b32.xlu0 %v1619_v7, %s2623_s30 }
 0x671   : > { %v2419_v10 = vpop.f32.mrb[17].mxu1  ;;  %2421 = vmatpush3.msk.msra.mxu1 %vm792_vm2, %v1756_v9  ;;  %v1765_v55 = vrot.slane %v1756_v9, 2  ;;  %v1761_v11 = vrot.slane %v1756_v9, 5  ;;  %v1993_v24 = vmul.f32 %v2568_v6, %v1756_v9 }
 0x672   : > { %2423 = vmatmul.mubr.msk.f32.vlgmr.msra.gmra.mrb[18].mxu1 %vm803_vm3, %v2304_v8 }
 0x673   : > { %1766 = vrot.lane.b32.xlu1 %v1765_v55, %s2624_s2  ;;  %v1995_v20 = vadd.f32 %v1994_v0, %v1993_v24  ;;  %2427 = vmatprep.mubr.msk.f32.mxu1 %vm895_vm4, %v2308_v17  ;;  %v2310_v0 = vld [vmem:[%s3314_s8 + $0x30] sm:$0xff] }
 0x674   : > { %1762 = vrot.lane.b32.xlu0 %v1761_v11, %s2625_s27 }
 0x675   : > { %1997 = vst.msk [vmem:[%s642_s22] sm:$0x7] %vm1996_vm0, %v1995_v20  ;;  %v2009_v28 = vmul.f32 %v1995_v20, %v1995_v20  ;;  %s2510_s22 = spop %2509  ;;  %v1322_v20 = vmul.f32 %v3070_v21, %v3190_v58 }
 0x676   : > { %v2008_v14 = vstv %s2510_s22 }
 0x677   : > { %1665 = vrot.lane.b32.xlu1 %v1624_v26, %s2623_s30  ;;  %v2010_v29 = vsel %vm1996_vm0, %v2009_v28, 0.0  ;;  %s645_s30 = scalar_lea.vmem %s3324_s18, %s3345_s28  ;;  %v1018_v26 = vadd.f32 %v3187_v54, %v3085_v32  ;;  %v1337_v28 = vadd.f32 %v3137_v13, %v1322_v20 }
 0x679   : > { %v1347_v30 = vadd.f32 %v1343_v47, %v1337_v28 }
 0x693   : > { %2011 = vadd.xlane.f32.xlu0 %v2010_v29  ;;  %v1645_v29 = vmul.f32 %v3074_v23, %v1441_v12 }
 0x695   : > { %v1660_v21 = vadd.f32 %v3139_v16, %v1645_v29 }
 0x6e2   : > { %v1664_v49 = vpop.permute.xlu0 %1663 }
 0x6e3   : > { %v1669_v50 = vadd.f32 %v1664_v49, %v1659_v48 }
 0x6e5   : > { %v1767_v53 = vpop.permute.xlu1 %1766 }
 0x6e6   : > { %v1763_v52 = vpop.permute.xlu0 %1762  ;;  %v1954_v23 = vmul.f32 %v3101_v39, %v1767_v53 }
 0x6e7   : > { %v1769_v15 = vsel %vm792_vm2, %v1756_v9, %v1763_v52  ;;  %v2311_v9 = vld [vmem:[%s3314_s8 + $0x38] sm:$0x1] }
 0x6e8   : > { %v1770_v18 = vsel %vm794_vm5, %v1769_v15, %v1767_v53 }
 0x6e9   : > { %v1666_v36 = vpop.permute.xlu1 %1665  ;;  %v1953_v13 = vmul.f32 %v3141_v25, %v1770_v18 }
 0x6ea   : > { %v1670_v32 = vadd.f32 %v1666_v36, %v1660_v21 }
 0x6eb   : > { %v1966_v16 = vadd.f32 %v3147_v27, %v1953_v13 }
 0x720   : > { %v2012_v56 = vpop.xlane.xlu0 %2011 }
 0x721   : > { %v2013_v57 = vrot.slane %v2012_v56, 4 }
 0x723   : > { %v2014_v59 = vadd.f32 %v2013_v57, %v2012_v56 }
 0x725   : > { %v2015_v60 = vrot.slane %v2014_v59, 2 }
 0x727   : > { %v2016_v51 = vadd.f32 %v2015_v60, %v2014_v59 }
 0x729   : > { %v2017_v61 = vrot.slane %v2016_v51, 1 }
 0x72b   : > { %v2018_v42 = vadd.f32 %v2017_v61, %v2016_v51 }
 0x72d   : > { %2511 = vpush %v2018_v42 }
 0x745   : > { %v1846_v38 = vpop.f32.mrb[18].mxu1 }
 0x746   : > { %v1847_v63 = vadd.f32 %v2305_v34, %v1846_v38  ;;  %v2424_v1 = vpop.f32.mrb[19].mxu1 }
 0x748   : > { %v1850_v2 = vmax.f32 %v1847_v63, 0.0 }
 0x74a   : > { %2425 = vmatprep.subr.mxu1 %v1850_v2 }
 0x74b   : > { %2426 = vmatpush3.msra.mxu1 %v1850_v2 }
 0x74c   : > { %2428 = vmatmul.mubr.msk.f32.vlgmr.msra.gmra.mrb[20].mxu1 %vm895_vm4, %v2309_v3 }
 0x75e   : > { %s2512_s2 = spop %2511 }
 0x75f   : > { %v2020_v4 = vstv %s2512_s2 }
 0x760   : > { %v2021_v5 = vadd.f32 5.5136313, %v2020_v4 }
 0x762   : > { %v2022_v33 = vmul.f32 -0.5, %v2021_v5 }
 0x764   : > { %v2023_v37 = vadd.f32 %v2022_v33, %v2008_v14 }
 0x766   : > { %v2024_v6 = vsub.f32 0.0, %v2023_v37 }
 0x768   : > { %v2025_v7 = vmul.f32 0.48089835, %v2024_v6 }
 0x76a   : > { %v2026_v8 = vadd.f32 4.0, %v2025_v7 }
 0x76c   : > { %2027 = vst.msk [vmem:[%s645_s30] sm:$0x1] %vm1988_vm10, %v2026_v8 }
 0x81f   : > { %v2429_v10 = vpop.f32.mrb[20].mxu1 }
 0x820   : > { %v1935_v55 = vadd.f32 %v2429_v10, %v2311_v9  ;;  %v1929_v11 = vpop.f32.mrb[21].mxu1 }
 0x821   : > { %v1930_v24 = vadd.f32 %v2310_v0, %v1929_v11 }
 0x822   : > { %1972 = vrot.lane.b32.xlu1 %v1935_v55, %s2614_s19 }
 0x823   : > { %1970 = vrot.lane.b32.xlu0 %v1930_v24, %s2614_s19  ;;  %s2321_s19 = sshll.u32 %s3345_s28, 4 }
 0x824   : > { %s623_s22 = scalar_lea.vmem %s3319_s13, %s2321_s19  ;;  %s628_s25 = scalar_lea.vmem %s3320_s14, %s2321_s19 }
 0x825   : > { %s633_s26 = scalar_lea.vmem %s3321_s15, %s2321_s19  ;;  %s638_s21 = scalar_lea.vmem %s3322_s16, %s2321_s19 }
 0x826   : > { %1023 = vrot.lane.b32.xlu1 %v1018_v26, %s2616_s20 }
 0x827   : > { %1021 = vrot.lane.b32.xlu0 %v3151_v31, %s2616_s20  ;;  %v1967_v31 = vadd.f32 %v3106_v43, %v1954_v23 }
 0x82a   : > { %1352 = vrot.lane.b32.xlu1 %v1347_v30, %s2618_s1 }
 0x82b   : > { %1350 = vrot.lane.b32.xlu0 %v3196_v62, %s2618_s1 }
 0x82e   : > { %1675 = vrot.lane.b32.xlu1 %v1670_v32, %s2621_s23 }
 0x82f   : > { %1673 = vrot.lane.b32.xlu0 %v1669_v50, %s2621_s23 }
 0x894   : > { %v1973_v54 = vpop.permute.xlu1 %1972 }
 0x895   : > { %v1977_v58 = vadd.f32 %v1973_v54, %v1967_v31  ;;  %v1971_v40 = vpop.permute.xlu0 %1970 }
 0x896   : > { %v1976_v41 = vadd.f32 %v1971_v40, %v1966_v16 }
 0x897   : > { %1982 = vrot.lane.b32.xlu1 %v1977_v58, %s2625_s27 }
 0x898   : > { %1980 = vrot.lane.b32.xlu0 %v1976_v41, %s2625_s27  ;;  %v1024_v39 = vpop.permute.xlu1 %1023 }
 0x899   : > { %1030 = vst.msk [vmem:[%s623_s22 + $0x8] sm:$0x1] %vm1029_vm11, %v1024_v39  ;;  %v1022_v25 = vpop.permute.xlu0 %1021 }
 0x89a   : > { %1028 = vst.msk [vmem:[%s623_s22] sm:$0xff] %vm1027_vm6, %v1022_v25 }
 0x89c   : > { %v1353_v43 = vpop.permute.xlu1 %1352 }
 0x89d   : > { %1359 = vst.msk [vmem:[%s628_s25 + $0x8] sm:$0x1] %vm1358_vm12, %v1353_v43  ;;  %v1351_v27 = vpop.permute.xlu0 %1350 }
 0x89e   : > { %1357 = vst.msk [vmem:[%s628_s25] sm:$0xff] %vm1356_vm7, %v1351_v27 }
 0x8a0   : > { %v1676_v62 = vpop.permute.xlu1 %1675 }
 0x8a1   : > { %1682 = vst.msk [vmem:[%s633_s26 + $0x8] sm:$0x1] %vm1681_vm13, %v1676_v62  ;;  %v1674_v44 = vpop.permute.xlu0 %1673 }
 0x8a2   : > { %1680 = vst.msk [vmem:[%s633_s26] sm:$0xff] %vm1679_vm9, %v1674_v44 }
 0x909   : > { %v1983_v45 = vpop.permute.xlu1 %1982 }
 0x90a   : > { %1989 = vst.msk [vmem:[%s638_s21 + $0x8] sm:$0x1] %vm1988_vm10, %v1983_v45  ;;  %v1981_v17 = vpop.permute.xlu0 %1980 }
 0x90b   : > { %1987 = vst.msk [vmem:[%s638_s21] sm:$0xff] %vm1986_vm14, %v1981_v17 }
 0x90c PF: > { %s3343_s2 = sld [smem:[#allocation5_spill]] }
 0x912   : > { %s30_s27 = sadd.s32 1, %s3343_s2  }
 0x913   : > { %p27_p3 = scmp.ge.s32.totalorder %s30_s27, 4  }
 0x915   :  { %29 = sbr.rel (!%p27_p3) target bundleno = 5 (0x5), region = 185 }
 0x91c   :  { %2123 = vsyncpa [#allocation3], 1 }
 0x91d   :  { %2125 = vsyncpa [#allocation3 + $0x1], 1 }

</bundles_post_ra>
